<compile_context>
chip_gen: v7x
topology: tpu7x:2x2x1
jax: 0.10.0
libtpu: 0.0.40
codegen_flags: <defaults>
</compile_context>

<pallas_src>
import jax
import jax.numpy as jnp
from jax.experimental import pallas as pl
from jax.experimental.pallas import tpu as pltpu

SUBLANE = 8
LANE = 128
TILE = 256          # A row/K tile (256-wide for the v6e/v7x 256x256 MXUs)


def _round_up(x, m):
    return ((x + m - 1) // m) * m


def _pad2d(x, rows, cols):
    r, c = x.shape
    return jnp.pad(x, ((0, rows - r), (0, cols - c)))


def _default_vmem_limit():
    # Explicit scoped-VMEM limit with headroom below the per-generation
    # physical ceiling (64 MiB v7x, 128 MiB v5e/v6e).
    try:
        cap = int(pltpu.get_tpu_info().vmem_capacity_bytes)
    except Exception:
        cap = 64 * 1024 * 1024
    return int(cap * 3 // 4)


# ----------------------------------------------------------------------------
# GraphConv layer:  H' = relu( A @ (H @ W) + b ),  A streamed in (TM,TK) tiles
# ----------------------------------------------------------------------------
def _gcn_layer_kernel(a_ref, h_ref, w_ref, b_ref, o_ref, acc_ref):
    k = pl.program_id(1)

    @pl.when(k == 0)
    def _():
        acc_ref[...] = jnp.zeros_like(acc_ref)

    # Small (TK, d_in) @ (d_in, d_out) matmul producing the K-slice of H@W.
    hw = jnp.dot(h_ref[...], w_ref[...], preferred_element_type=jnp.float32)
    # n^2-dominant matmul: (TM, TK) @ (TK, d_out), f32 accumulation.
    acc_ref[...] += jnp.dot(a_ref[...], hw.astype(a_ref.dtype),
                            preferred_element_type=jnp.float32)

    @pl.when(k == pl.num_programs(1) - 1)
    def _():
        # Bias add + ReLU in f32 (VPU work stays f32 on all generations).
        o_ref[...] = jnp.maximum(acc_ref[...] + b_ref[...], 0.0).astype(o_ref.dtype)


def _gcn_layer(a_pad, h_pad, w_pad, b_pad, *, tm, tk, vmem_limit):
    n_p = a_pad.shape[0]
    d_in_p = h_pad.shape[1]
    d_out_p = w_pad.shape[1]
    assert n_p % tm == 0 and n_p % tk == 0
    n_i, n_k = n_p // tm, n_p // tk

    itemsize = jnp.dtype(a_pad.dtype).itemsize
    cost = pl.CostEstimate(
        flops=int(2 * n_p * n_p * d_out_p + 2 * n_i * n_p * d_in_p * d_out_p),
        transcendentals=0,
        bytes_accessed=int(a_pad.size * itemsize
                           + n_i * h_pad.size * itemsize
                           + w_pad.size * itemsize
                           + n_p * d_out_p * itemsize),
    )

    return pl.pallas_call(
        _gcn_layer_kernel,
        out_shape=jax.ShapeDtypeStruct((n_p, d_out_p), a_pad.dtype),
        grid_spec=pltpu.PrefetchScalarGridSpec(
            num_scalar_prefetch=0,
            grid=(n_i, n_k),
            in_specs=[
                pl.BlockSpec((tm, tk), lambda i, k: (i, k)),          # A tile
                pl.BlockSpec((tk, d_in_p), lambda i, k: (k, 0)),      # H K-tile
                pl.BlockSpec((d_in_p, d_out_p), lambda i, k: (0, 0)), # W (resident)
                pl.BlockSpec((1, d_out_p), lambda i, k: (0, 0)),      # bias
            ],
            out_specs=pl.BlockSpec((tm, d_out_p), lambda i, k: (i, 0)),
            scratch_shapes=[pltpu.VMEM((tm, d_out_p), jnp.float32)],
        ),
        compiler_params=pltpu.CompilerParams(
            dimension_semantics=("parallel", "arbitrary"),
            vmem_limit_bytes=vmem_limit),
        cost_estimate=cost,
    )(a_pad, h_pad, w_pad, b_pad)


# ----------------------------------------------------------------------------
# Scalar-prefetched user-row gather + SR head:  R = tanh(h[u] @ W1 + b1) @ W2 + b2
# ----------------------------------------------------------------------------
def _sr_head_kernel(users_ref, h_ref, w1_ref, b1_ref, w2_ref, b2_ref, r_ref):
    del users_ref  # consumed by the data-dependent index_map, not the body
    hrow = h_ref[0].astype(jnp.float32)                       # (1, hid_p)
    z = jnp.tanh(jnp.dot(hrow, w1_ref[...],
                         preferred_element_type=jnp.float32) + b1_ref[...])
    r = jnp.dot(z, w2_ref[...], preferred_element_type=jnp.float32) + b2_ref[...]
    r_ref[0] = r.astype(r_ref.dtype)


def _sr_head(h_pad, users, w1p, b1p, w2p, b2p, *, vmem_limit):
    n_p, hid_p = h_pad.shape
    mid_p = w1p.shape[1]
    out_p = w2p.shape[1]
    n_users = users.shape[0]
    h3 = h_pad.reshape(n_p, 1, hid_p)

    cost = pl.CostEstimate(
        flops=int(2 * n_users * (hid_p * mid_p + mid_p * out_p)),
        transcendentals=int(n_users * mid_p),
        bytes_accessed=int(n_users * hid_p * jnp.dtype(h_pad.dtype).itemsize
                           + (w1p.size + w2p.size) * 4
                           + n_users * out_p * 4),
    )

    r = pl.pallas_call(
        _sr_head_kernel,
        out_shape=jax.ShapeDtypeStruct((n_users, 1, out_p), jnp.float32),
        grid_spec=pltpu.PrefetchScalarGridSpec(
            num_scalar_prefetch=1,
            grid=(n_users,),
            in_specs=[
                # Data-dependent row gather from HBM, one user row per step.
                pl.BlockSpec((1, 1, hid_p), lambda i, u: (u[i], 0, 0)),
                pl.BlockSpec(w1p.shape, lambda i, u: (0, 0)),
                pl.BlockSpec(b1p.shape, lambda i, u: (0, 0)),
                pl.BlockSpec(w2p.shape, lambda i, u: (0, 0)),
                pl.BlockSpec(b2p.shape, lambda i, u: (0, 0)),
            ],
            out_specs=pl.BlockSpec((1, 1, out_p), lambda i, u: (i, 0, 0)),
        ),
        compiler_params=pltpu.CompilerParams(
            dimension_semantics=("arbitrary",),
            vmem_limit_bytes=vmem_limit),
        cost_estimate=cost,
    )(users.astype(jnp.int32), h3, w1p, b1p, w2p, b2p)
    return r[:, 0, :]


# ----------------------------------------------------------------------------
# One-time preprocessing (hoisted out of the per-call forward)
# ----------------------------------------------------------------------------
def _normalized_adjacency(adj):
    """Symmetric GCN normalization with self-loops: D^-1/2 (A+I) D^-1/2."""
    n = adj.shape[0]
    a = adj.astype(jnp.float32) + jnp.eye(n, dtype=jnp.float32)
    d_inv_sqrt = 1.0 / jnp.sqrt(a.sum(axis=1))
    return a * d_inv_sqrt[:, None] * d_inv_sqrt[None, :]


def prepare_graph(adj, *, tile=TILE, compute_dtype=jnp.float32):
    """Normalize + pad + cast the adjacency ONCE (amortized across forwards)."""
    n = adj.shape[0]
    a_norm = _normalized_adjacency(adj)
    n_p = _round_up(max(n, tile), tile)
    a_pad = _pad2d(a_norm, n_p, n_p).astype(compute_dtype)
    return {"a": a_pad, "n": n, "n_p": n_p, "tile": tile}


def prepare_params(params, in_dim, *, compute_dtype=jnp.float32):
    """Pad weights/biases to tile-aligned shapes ONCE."""
    gcn_p = []
    for (w, b) in params["gcn"]:
        di_p = _round_up(w.shape[0], LANE)
        do_p = _round_up(w.shape[1], LANE)
        gcn_p.append((_pad2d(w.astype(compute_dtype), di_p, do_p),
                      _pad2d(b.reshape(1, -1).astype(jnp.float32), 1, do_p)))
    (w1, b1), (w2, b2) = params["sr"]
    hid_p = _round_up(w1.shape[0], LANE)
    mid_p = _round_up(w1.shape[1], LANE)
    out_p = _round_up(w2.shape[1], LANE)
    sr_p = (_pad2d(w1.astype(jnp.float32), hid_p, mid_p),
            _pad2d(b1.reshape(1, -1).astype(jnp.float32), 1, mid_p),
            _pad2d(w2.astype(jnp.float32), mid_p, out_p),
            _pad2d(b2.reshape(1, -1).astype(jnp.float32), 1, out_p))
    return {"gcn": gcn_p, "sr": sr_p,
            "in_dim": in_dim,
            "hid_last": params["gcn"][-1][0].shape[1],
            "out_dim": params["sr"][1][0].shape[1]}


# ----------------------------------------------------------------------------
# Forward pass (mirrors Encoder.forward; dropout = identity / eval mode)
# ----------------------------------------------------------------------------
def encoder_forward(graph, pparams, features, users,
                    mapped_feature=None, isreplace=False):
    """Returns (R, h) matching the PyTorch module's forward."""
    h0 = features
    if isreplace:
        h0 = h0.at[users].set(mapped_feature)   # index glue, plain JAX

    n = graph["n"]
    n_p = graph["n_p"]
    tm = tk = graph["tile"]
    compute_dtype = graph["a"].dtype
    vmem_limit = _default_vmem_limit()

    in_p = pparams["gcn"][0][0].shape[0]
    h = _pad2d(h0.astype(compute_dtype), n_p, in_p)

    # TODO(synk): nn.Dropout between layers treated as identity (eval mode).
    for (w_p, b_p) in pparams["gcn"]:
        h = _gcn_layer(graph["a"], h, w_p, b_p, tm=tm, tk=tk,
                       vmem_limit=vmem_limit)

    w1p, b1p, w2p, b2p = pparams["sr"]
    r_pad = _sr_head(h, users, w1p, b1p, w2p, b2p, vmem_limit=vmem_limit)

    R = r_pad[:, :pparams["out_dim"]].astype(jnp.float32)
    h_out = h[:n, :pparams["hid_last"]].astype(jnp.float32)
    return R, h_out


# ----------------------------------------------------------------------------
# Parameter init + pure-JAX reference
# ----------------------------------------------------------------------------
def make_params(key, in_dim, n_hiddens, out_dim):
    params = {"gcn": [], "sr": []}
    dims = [in_dim] + list(n_hiddens)
    for i in range(len(n_hiddens)):
        key, kw, kb = jax.random.split(key, 3)
        w = jax.random.normal(kw, (dims[i], dims[i + 1]), jnp.float32) * 0.1
        b = jax.random.normal(kb, (dims[i + 1],), jnp.float32) * 0.01
        params["gcn"].append((w, b))
    # SR_layer = Linear(n_hiddens[-1], 64) -> Tanh -> Linear(64, out_dim)
    key, k1, k2, k3, k4 = jax.random.split(key, 5)
    params["sr"].append((
        jax.random.normal(k1, (n_hiddens[-1], 64), jnp.float32) * 0.1,
        jax.random.normal(k2, (64,), jnp.float32) * 0.01))
    params["sr"].append((
        jax.random.normal(k3, (64, out_dim), jnp.float32) * 0.1,
        jax.random.normal(k4, (out_dim,), jnp.float32) * 0.01))
    return params


def encoder_forward_ref(params, a_norm, features, users):
    h = features
    for (w, b) in params["gcn"]:
        h = jnp.maximum(a_norm @ (h @ w) + b, 0.0)
    user_h = h[users]
    (w1, b1), (w2, b2) = params["sr"]
    R = jnp.tanh(user_h @ w1 + b1) @ w2 + b2
    return R, h


if __name__ == "__main__":
    key = jax.random.PRNGKey(0)

    # Small shapes (but big enough to exercise a (2, 2) tile grid over A).
    N_NODES = 384
    IN_DIM = 8
    N_HIDDENS = [32, 32]   # n_layers = 2
    OUT_DIM = 4

    key, kf, ka = jax.random.split(key, 3)
    features = jax.random.normal(kf, (N_NODES, IN_DIM), jnp.float32)

    # Deterministic synthetic undirected graph (dense adjacency).
    adj_rand = jax.random.uniform(ka, (N_NODES, N_NODES))
    adj = (adj_rand + adj_rand.T > 1.3).astype(jnp.float32)
    adj = adj * (1.0 - jnp.eye(N_NODES))

    params = make_params(key, IN_DIM, N_HIDDENS, OUT_DIM)
    users = jnp.array([3, 17, 101, 42, 250, 0], dtype=jnp.int32)

    # Pure-JAX reference.
    a_norm = _normalized_adjacency(adj)
    R_ref, h_ref = encoder_forward_ref(params, a_norm, features, users)

    # --- f32 path (exact zero padding; matches to 1e-4) ---
    graph32 = prepare_graph(adj, compute_dtype=jnp.float32)
    pparams32 = prepare_params(params, IN_DIM, compute_dtype=jnp.float32)
    R32, h32 = encoder_forward(graph32, pparams32, features, users)
    jax.block_until_ready((R32, h32))
    assert R32.shape == (users.shape[0], OUT_DIM)
    assert h32.shape == (N_NODES, N_HIDDENS[-1])
    assert jnp.allclose(R32, R_ref, atol=1e-4, rtol=1e-4)
    assert jnp.allclose(h32, h_ref, atol=1e-4, rtol=1e-4)

    # --- bf16 path (halved A HBM traffic, bf16 MXU rate, f32 accumulation) ---
    graph16 = prepare_graph(adj, compute_dtype=jnp.bfloat16)
    pparams16 = prepare_params(params, IN_DIM, compute_dtype=jnp.bfloat16)
    R16, h16 = encoder_forward(graph16, pparams16, features, users)
    jax.block_until_ready((R16, h16))
    assert jnp.allclose(R16, R_ref, atol=2e-2, rtol=2e-2)
    assert jnp.allclose(h16, h_ref, atol=2e-2, rtol=2e-2)

    print("KERNEL_OK")
</pallas_src>

<mosaic_0001>
module attributes {stable_mosaic.version = 11 : i64} {
  func.func @_gcn_layer_kernel(%arg0: i32, %arg1: i32, %arg2: memref<256x256xf32, #tpu.memory_space<vmem>>, %arg3: memref<256x128xf32, #tpu.memory_space<vmem>>, %arg4: memref<128x128xf32, #tpu.memory_space<vmem>>, %arg5: memref<1x128xf32, #tpu.memory_space<vmem>>, %arg6: memref<256x128xf32, #tpu.memory_space<vmem>>, %arg7: memref<256x128xf32, #tpu.memory_space<vmem>>) attributes {dimension_semantics = [#tpu.dimension_semantics<parallel>, #tpu.dimension_semantics<arbitrary>], iteration_bounds = array<i64: 2, 2>, scalar_prefetch = 0 : i64, scratch_operands = 1 : i64, tpu.core_type = #tpu.core_type<tc>, window_params = [{transform_indices = @transform_0, window_bounds = array<i64: 256, 256>}, {transform_indices = @transform_1, window_bounds = array<i64: 256, 128>}, {pipeline_mode = #tpu.pipeline_mode<synchronous>, transform_indices = @transform_2, window_bounds = array<i64: 128, 128>}, {pipeline_mode = #tpu.pipeline_mode<synchronous>, transform_indices = @transform_3, window_bounds = array<i64: 1, 128>}, {transform_indices = @transform_4, window_bounds = array<i64: 256, 128>}]} {
    %c0_i32 = arith.constant 0 : i32
    %0 = arith.cmpi eq, %arg1, %c0_i32 : i32
    %1 = arith.extui %0 : i1 to i32
    %c0_i32_0 = arith.constant 0 : i32
    %2 = arith.cmpi ne, %1, %c0_i32_0 : i32
    scf.if %2 {
      %cst_12 = arith.constant 0.000000e+00 : f32
      %14 = vector.broadcast %cst_12 : f32 to vector<256x128xf32>
      %c0_13 = arith.constant 0 : index
      %c0_14 = arith.constant 0 : index
      %15 = vector.load %arg7[%c0_13, %c0_14] : memref<256x128xf32, #tpu.memory_space<vmem>>, vector<256x128xf32>
      tpu.vector_store %arg7[%c0_13, %c0_14], %14 {strides = array<i32>} : memref<256x128xf32, #tpu.memory_space<vmem>>, vector<256x128xf32>,
    } else {
    }
    %c0 = arith.constant 0 : index
    %c0_1 = arith.constant 0 : index
    %3 = vector.load %arg3[%c0, %c0_1] : memref<256x128xf32, #tpu.memory_space<vmem>>, vector<256x128xf32>
    %c0_2 = arith.constant 0 : index
    %c0_3 = arith.constant 0 : index
    %4 = vector.load %arg4[%c0_2, %c0_3] : memref<128x128xf32, #tpu.memory_space<vmem>>, vector<128x128xf32>
    %cst = arith.constant dense<0.000000e+00> : vector<256x128xf32>
    %5 = tpu.matmul %3, %4, %cst {dimension_numbers = #tpu.dot_dimension_numbers<[1], [0], [0], [1], [0, 0, 1, 1], [], []>} : vector<256x128xf32>, vector<128x128xf32>, vector<256x128xf32> -> vector<256x128xf32>
    %c0_4 = arith.constant 0 : index
    %c0_5 = arith.constant 0 : index
    %6 = vector.load %arg7[%c0_4, %c0_5] : memref<256x128xf32, #tpu.memory_space<vmem>>, vector<256x128xf32>
    %c0_6 = arith.constant 0 : index
    %c0_7 = arith.constant 0 : index
    %7 = vector.load %arg2[%c0_6, %c0_7] : memref<256x256xf32, #tpu.memory_space<vmem>>, vector<256x256xf32>
    %cst_8 = arith.constant dense<0.000000e+00> : vector<256x128xf32>
    %8 = tpu.matmul %7, %5, %cst_8 {dimension_numbers = #tpu.dot_dimension_numbers<[1], [0], [0], [1], [0, 0, 1, 1], [], []>} : vector<256x256xf32>, vector<256x128xf32>, vector<256x128xf32> -> vector<256x128xf32>
    %9 = arith.addf %6, %8 : vector<256x128xf32>
    %c0_9 = arith.constant 0 : index
    %c0_10 = arith.constant 0 : index
    %10 = vector.load %arg7[%c0_9, %c0_10] : memref<256x128xf32, #tpu.memory_space<vmem>>, vector<256x128xf32>
    tpu.vector_store %arg7[%c0_9, %c0_10], %9 {strides = array<i32>} : memref<256x128xf32, #tpu.memory_space<vmem>>, vector<256x128xf32>,
    %c1_i32 = arith.constant 1 : i32
    %11 = arith.cmpi eq, %arg1, %c1_i32 : i32
    %12 = arith.extui %11 : i1 to i32
    %c0_i32_11 = arith.constant 0 : i32
    %13 = arith.cmpi ne, %12, %c0_i32_11 : i32
    scf.if %13 {
      %c0_12 = arith.constant 0 : index
      %c0_13 = arith.constant 0 : index
      %14 = vector.load %arg7[%c0_12, %c0_13] : memref<256x128xf32, #tpu.memory_space<vmem>>, vector<256x128xf32>
      %c0_14 = arith.constant 0 : index
      %c0_15 = arith.constant 0 : index
      %15 = vector.load %arg5[%c0_14, %c0_15] : memref<1x128xf32, #tpu.memory_space<vmem>>, vector<1x128xf32>
      %16 = vector.broadcast %15 : vector<1x128xf32> to vector<256x128xf32>
      %17 = arith.addf %14, %16 : vector<256x128xf32>
      %cst_16 = arith.constant 0.000000e+00 : f32
      %18 = vector.broadcast %cst_16 : f32 to vector<256x128xf32>
      %19 = arith.maximumf %17, %18 : vector<256x128xf32>
      %c0_17 = arith.constant 0 : index
      %c0_18 = arith.constant 0 : index
      %20 = vector.load %arg6[%c0_17, %c0_18] : memref<256x128xf32, #tpu.memory_space<vmem>>, vector<256x128xf32>
      tpu.vector_store %arg6[%c0_17, %c0_18], %19 {strides = array<i32>} : memref<256x128xf32, #tpu.memory_space<vmem>>, vector<256x128xf32>,
    } else {
    }
    return
  }
  func.func @transform_0(%arg0: i32, %arg1: i32) -> (i32, i32) {
    %c0_i32 = arith.constant 0 : i32
    return %arg0, %arg1 : i32, i32
  }
  func.func @transform_1(%arg0: i32, %arg1: i32) -> (i32, i32) {
    %c0_i32 = arith.constant 0 : i32
    %c0_i32_0 = arith.constant 0 : i32
    return %arg1, %c0_i32 : i32, i32
  }
  func.func @transform_2(%arg0: i32, %arg1: i32) -> (i32, i32) {
    %c0_i32 = arith.constant 0 : i32
    %c0_i32_0 = arith.constant 0 : i32
    %c0_i32_1 = arith.constant 0 : i32
    return %c0_i32, %c0_i32_0 : i32, i32
  }
  func.func @transform_3(%arg0: i32, %arg1: i32) -> (i32, i32) {
    %c0_i32 = arith.constant 0 : i32
    %c0_i32_0 = arith.constant 0 : i32
    %c0_i32_1 = arith.constant 0 : i32
    return %c0_i32, %c0_i32_0 : i32, i32
  }
  func.func @transform_4(%arg0: i32, %arg1: i32) -> (i32, i32) {
    %c0_i32 = arith.constant 0 : i32
    %c0_i32_0 = arith.constant 0 : i32
    return %arg0, %c0_i32 : i32, i32
  }
}

</mosaic_0001>

<bundles_post_ra>
// kernel: tpu_custom_call.1
= control target key start
LH: loop header
LB: loop body
LE: loop exit
PB: predicated region body
PF: predicated region fallthrough
CT: control target
= control target key end

     0   :  { %s2540_s0 = inlined_call_operand.hbm [shape: f32[512,512], index: 0, kind: input, shape index: {}]   ;;  %s2541_s1 = inlined_call_operand.hbm [shape: f32[512,128], index: 1, kind: input, shape index: {}]   ;;  %s2542_s2 = inlined_call_operand.hbm [shape: f32[128,128], index: 2, kind: input, shape index: {}]   ;;  %s2543_s3 = inlined_call_operand.vmem [shape: f32[1,128], index: 3, kind: input, shape index: {}]   ;;  %s2544_s4 = inlined_call_operand.hbm [shape: f32[512,128], index: 4, kind: output, shape index: {}]  }
   0x1   :  { %2567 = sst [smem:[#allocation24_spill]] %s2542_s2 }
   0x2   :  { %2568 = sst [smem:[#allocation25_spill]] %s2543_s3 }
   0x3   :  { %2569 = sst [smem:[#allocation26_spill]] %s2544_s4 }
   0x4   :  { %9 = vsyncpa [#allocation4], 0 }
   0x5   :  { %11 = vsyncpa [#allocation4 + $0x1], 0 }
   0x6   :  { %12 = vsyncpa [#allocation7], 0 }
   0x7   :  { %14 = vsyncpa [#allocation7 + $0x1], 0 }
   0x8   :  { %15 = vsyncpa [#allocation5], 0 }
   0x9   :  { %17 = vsyncpa [#allocation5 + $0x1], 0  ;;  %s1959_s15 = smov 0   ;;  %s1961_s16 = smov 0  }
   0xa   :  { %s1963_s17 = smov 0   ;;  %s1965_s18 = smov 0  }
   0xb   :  { %s1967_s19 = smov 0   ;;  %s1969_s20 = smov 0  }
   0xc   :  { %s1971_s21 = smov 0   ;;  %s1973_s22 = smov 0  }
   0xd   :  { %s1975_s23 = smov 0   ;;  %s1977_s24 = smov 0  }
   0xe   :  { %s1979_s25 = smov 0   ;;  %s1981_s26 = smov 0  }
   0xf   :  { %s1983_s27 = smov 0   ;;  %s1985_s28 = smov 0  }
  0x10 LB: > { %2570 = sst [smem:[#allocation14_spill]] %s1867_s15  ;;  %s2026_s29 = sadd.s32 4294967295, %s1919_s28   ;;  %s1919_s28 = sphi %s1985_s28, %s23_s28   ;;  %s1915_s27 = sphi %s1983_s27, %s2630_s27   ;;  %s1911_s26 = sphi %s1981_s26, %s2629_s26   ;;  %s1907_s25 = sphi %s1979_s25, %s2628_s25   ;;  %s1903_s24 = sphi %s1977_s24, %s2627_s24   ;;  %s1899_s23 = sphi %s1975_s23, %s2626_s23   ;;  %s1895_s22 = sphi %s1973_s22, %s2625_s22   ;;  %s1891_s21 = sphi %s1971_s21, %s2624_s21   ;;  %s1887_s20 = sphi %s1969_s20, %s2623_s20   ;;  %s1883_s19 = sphi %s1967_s19, %s2622_s19   ;;  %s1879_s18 = sphi %s1965_s18, %s2621_s18   ;;  %s1875_s17 = sphi %s1963_s17, %s2620_s17   ;;  %s1871_s16 = sphi %s1961_s16, %s2619_s16   ;;  %s1867_s15 = sphi %s1959_s15, %s2616_s15  }
  0x11   : > { %2571 = sst [smem:[#allocation15_spill]] %s1871_s16  ;;  %s1258_s30 = sadd.s32 4294967294, %s1919_s28  }
  0x12   : > { %2572 = sst [smem:[#allocation16_spill]] %s1903_s24  ;;  %p57_p0 = scmp.ne.s32.totalorder %s1895_s22, %s1891_s21 }
  0x13   : > { %2573 = sst [smem:[#allocation17_spill]] %s1907_s25  ;;  %p2547_p1 = scmp.eq.s32.totalorder %s2026_s29, 0 }
  0x14   : > { %2574 = sst [smem:[#allocation18_spill]] %s2026_s29  ;;  %p83_p2 = scmp.ne.s32.totalorder %s1883_s19, %s1879_s18 }
  0x15   : > { %p2035_p3 = por %p2547_p1, %p57_p0  ;;  %p148_p4 = scmp.ne.s32.totalorder %s1875_s17, %s1871_s16 }
  0x16   : > { %p2043_p5 = por %p83_p2, %p2547_p1  ;;  %p149_p6 = scmp.eq.s32.totalorder %s2026_s29, 3 }
  0x17   : > { %s2575_s6 = scalar_select %p2035_p3, 1, 0 }
  0x18   : > { %s2576_s7 = scalar_select %p2043_p5, 1, 0 }
  0x19   : > { %p154_p7 = scmp.ne.s32.totalorder %s1871_s16, %s1867_s15  ;;  %p155_p8 = scmp.eq.s32.totalorder %s1258_s30, 3 }
  0x1a   : > { %2577 = sst [smem:[#allocation19_spill]] %s2576_s7  ;;  %p2050_p9 = por %p149_p6, %p148_p4 }
  0x1b   : > { %p1259_p10 = scmp.ge.s32.totalorder %s1919_s28, 1  ;;  %p2055_p11 = por %p155_p8, %p154_p7 }
  0x1c   : > { %s2578_s8 = scalar_select %p2050_p9, 1, 0 }
  0x1d   : > { %s2580_s9 = scalar_select %p2055_p11, 1, 0 }
  0x1e   : > { %2579 = sst [smem:[#allocation20_spill]] %s2578_s8  ;;  %p162_p12 = scmp.lt.s32.totalorder %s1919_s28, 5 }
  0x1f   : > { %2581 = sst [smem:[#allocation21_spill]] %s2580_s9  ;;  %s1921_s11 = smov [#allocation8]  }
  0x20   : > { %p2060_p13 = pnand %p1259_p10, %p162_p12  ;;  %s174_s12 = sshll.u32 %s1921_s11, 4  ;;  %s175_s12 = int_to_ptr.vmem [resolvable:$true] %s174_s12 }
  0x21   : > { %s2584_s2 = sld [smem:[#allocation24_spill]] }
  0x22   : > { %s2582_s10 = scalar_select %p2060_p13, 1, 0 }
  0x23   : > { %p1536_p0 = pneg %p2060_p13 }
  0x25   : > { %p2068_p2 = pnand %p1536_p0, %p2547_p1 }
  0x27   : > { %s1677_s21 = scalar_lea.hbm %s2584_s2, 2048  ;;  %p1679_p6 = pneg %p2068_p2 }
  0x28   : > { %p1678_p4 = scmp.ne.s32.totalorder %s2584_s2, %s1677_s21  ;;  %p1684_p10 = scmp.lt.u32.totalorder %s1677_s21, %s2584_s2 }
  0x2a   : > { %p1680_p7 = pnand %p1679_p6, %p1678_p4 }
  0x2c   : > { %p1681_p8 = pneg %p1680_p7 }
  0x2e   : > { %p1686_p12 = pnand %p1684_p10, %p1681_p8 }
  0x30   : > { %1689 = shalt.err (!%p1686_p12)
}
  0x31   : > { %s1690_s15 = scalar_lea.vmem %s175_s12, 2048  ;;  %p1698_p9 = scmp.lt.s32.totalorder %s175_s12, %s175_s12 }
  0x32   : > { %p1691_p0 = scmp.ne.s32.totalorder %s175_s12, %s1690_s15  ;;  %p1699_p5 = scmp.lt.s32.totalorder %s1690_s15, %s1690_s15 }
  0x34   : > { %p1693_p1 = pnand %p1691_p0, %p1679_p6  ;;  %p1700_p3 = por %p1699_p5, %p1698_p9 }
  0x36   : > { %p1694_p11 = pneg %p1693_p1 }
  0x38   : > { %p1701_p13 = pnand %p1700_p3, %p1694_p11 }
  0x3a   : > { %1704 = shalt.err (!%p1701_p13)
}
  0x3b   : > { %s2552_s5 = smov 128   ;;  %s2553_s9 = smov 8  }
  0x3c   : > { %1539 = dma.hbm_to_vmem [thread:$0]  (!%p2068_p2), %s2584_s2, 2048, %s175_s12, [#allocation7], %s2552_s5, %s2552_s5, %s2553_s9  }
  0x3d   : > { %s32_s18 = sadd.s32 1, %s1911_s26  ;;  %s35_s21 = sadd.s32 1, %s1915_s27 }
  0x3e   : > { %p33_p1 = scmp.ge.s32.totalorder %s32_s18, 2  ;;  %s44_s30 = sadd.s32 1, %s1899_s23 }
  0x3f   : > { %p51_p3 = scmp.ne.s32.totalorder %s1899_s23, %s1895_s22  ;;  %p2566_p5 = scmp.eq.s32.totalorder %s1919_s28, 0 }
  0x40   : > { %s2632_s18 = smov (%p33_p1, %s32_s18), 0  ;;  %s2634_s21 = smov (!%p33_p1, %s35_s21), %s1915_s27 }
  0x41   : > { %2585 = sst [smem:[#allocation22_spill]] %s2632_s18  ;;  %s2101_s13 = ssub.s32 %s1911_s26, %s2632_s18 }
  0x42   : > { %p37_p9 = scmp.ge.s32.totalorder %s2634_s21, 2  ;;  %p68_p11 = scmp.eq.s32.totalorder %s2101_s13, 0 }
  0x43   : > { %p2107_p13 = por %p2566_p5, %p51_p3  ;;  %p2565_p2 = scmp.lt.s32.totalorder %s1919_s28, 4 }
  0x44   : > { %s2636_s21 = smov (%p37_p9, %s2634_s21), 0  ;;  %s191_s11 = sand.u32 1, %s1899_s23  }
  0x45   : > { %2587 = sst [smem:[#allocation23_spill]] %s2636_s21  ;;  %s1264_s15 = sshll.u32 %s1911_s26, 1 }
  0x46   : > { %s39_s14 = ssub.s32 %s1915_s27, %s2636_s21  ;;  %s1262_s9 = sshll.u32 %s191_s11, 9 }
  0x47   : > { %s41_s5 = sor.u32 %s2101_s13, %s39_s14  ;;  %p136_p4 = scmp.eq.s32.totalorder %s39_s14, 0 }
  0x48   : > { %p42_p6 = scmp.eq.s32.totalorder %s41_s5, 0  ;;  %s2588_s2 = sadd.s32 1, %s1875_s17 }
  0x49   : > { %s2122_s18 = scalar_select %p136_p4, %s1875_s17, %s2588_s2  }
  0x4a   : > { %s2125_s4 = scalar_select %p42_p6, %s1899_s23, %s44_s30  }
  0x4b   : > { %s1283_s8 = sshll.u32 %s1915_s27, 7  ;;  %s195_s3 = scalar_lea.vmem [#allocation3], %s1262_s9 }
  0x4c   : > { %s202_s25 = sadd.s32 %s1283_s8, %s1264_s15  ;;  %s205_s24 = sshll.u32 %s195_s3, 4  ;;  %s2128_s24 = int_to_ptr.vmem [resolvable:$true] %s205_s24 }
  0x4d   : > { %s1266_s16 = sshll.u32 %s202_s25, 7  ;;  %p2139_p7 = pnand %p2565_p2, %p2107_p13 }
  0x4e   : > { %s2133_s21 = scalar_lea.hbm %s2540_s0, %s1266_s16  ;;  %s2143_s3 = scalar_lea.sflag [#allocation4], %s191_s11 }
  0x4f   : > { %s1705_s25 = scalar_lea.hbm %s2133_s21, 8192  ;;  %p1707_p10 = pneg %p2139_p7 }
  0x50   : > { %p1706_p8 = scmp.ne.s32.totalorder %s2133_s21, %s1705_s25  ;;  %s1710_s7 = scalar_lea.hbm %s2540_s0, 32768 }
  0x51   : > { %p1711_p1 = scmp.lt.u32.totalorder %s2133_s21, %s2540_s0  ;;  %p1712_p3 = scmp.lt.u32.totalorder %s1710_s7, %s1705_s25 }
  0x52   : > { %p1708_p12 = pnand %p1707_p10, %p1706_p8  ;;  %p1714_p13 = scmp.lt.u32.totalorder %s1705_s25, %s2133_s21 }
  0x53   : > { %p1713_p9 = por %p1712_p3, %p1711_p1 }
  0x54   : > { %p1709_p0 = pneg %p1708_p12 }
  0x55   : > { %p1715_p4 = por %p1714_p13, %p1713_p9 }
  0x57   : > { %p1716_p6 = pnand %p1715_p4, %p1709_p0 }
  0x59   : > { %1719 = shalt.err (!%p1716_p6)
}
  0x5a   : > { %s1720_s9 = scalar_lea.vmem %s2128_s24, 8192  ;;  %s1924_s30 = smov [#allocation3]  }
  0x5b   : > { %p1721_p8 = scmp.ne.s32.totalorder %s2128_s24, %s1720_s9  ;;  %s1725_s12 = sshll.u32 %s1924_s30, 4  ;;  %s1726_s12 = int_to_ptr.vmem [resolvable:$false] %s1725_s12 }
  0x5c   : > { %s1727_s11 = scalar_lea.vmem %s1726_s12, 16384  ;;  %p1728_p5 = scmp.lt.s32.totalorder %s2128_s24, %s1726_s12 }
  0x5d   : > { %p1723_p12 = pnand %p1721_p8, %p1707_p10  ;;  %p1729_p1 = scmp.lt.s32.totalorder %s1727_s11, %s1720_s9 }
  0x5f   : > { %p1724_p2 = pneg %p1723_p12  ;;  %p1730_p3 = por %p1729_p1, %p1728_p5 }
  0x61   : > { %p1731_p9 = pnand %p1730_p3, %p1724_p2 }
  0x63   : > { %1734 = shalt.err (!%p1731_p9)
}
  0x64   : > { %s1925_s15 = smov 512   ;;  %s1926_s14 = smov 256  }
  0x65   : > { %s1927_s25 = smov 16   ;;  %s215_s16 = sand.u32 1, %s1919_s28  }
  0x66   : > { %1543 = dma.hbm_to_vmem [thread:$0]  (!%p2139_p7), %s2133_s21, 8192, %s2128_s24, %s2143_s3, %s1925_s15, %s1926_s14, %s1927_s25  }
  0x67   : > { %s70_s29 = sadd.s32 1, %s1887_s20  ;;  %p77_p5 = scmp.ne.s32.totalorder %s1887_s20, %s1883_s19 }
  0x68   : > { %s2178_s7 = scalar_select %p68_p11, %s1887_s20, %s70_s29  }
  0x69   : > { %p2590_p2 = scmp.eq.s32.totalorder %s1919_s28, 0  ;;  %s217_s8 = sand.u32 1, %s1887_s20  }
  0x6a   : > { %s1267_s5 = sshll.u32 %s217_s8, 8  ;;  %s1284_s9 = sshll.u32 %s1911_s26, 12 }
  0x6b   : > { %p79_p10 = por %p77_p5, %p2590_p2  ;;  %s2187_s11 = scalar_lea.hbm %s2541_s1, %s1284_s9 }
  0x6c   : > { %s219_s24 = scalar_lea.vmem [#allocation6], %s1267_s5  ;;  %p2591_p7 = scmp.lt.s32.totalorder %s1919_s28, 4 }
  0x6d   : > { %s226_s21 = sshll.u32 %s219_s24, 4  ;;  %s2197_s2 = scalar_lea.sflag [#allocation7], %s215_s16  ;;  %s2195_s21 = int_to_ptr.vmem [resolvable:$true] %s226_s21 }
  0x6e   : > { %p2191_p0 = pnand %p2591_p7, %p79_p10  ;;  %s1735_s3 = scalar_lea.hbm %s2187_s11, 4096 }
  0x6f   : > { %p1736_p11 = scmp.ne.s32.totalorder %s2187_s11, %s1735_s3  ;;  %s1740_s25 = scalar_lea.hbm %s2541_s1, 8192 }
  0x70   : > { %p1737_p13 = pneg %p2191_p0  ;;  %p1741_p8 = scmp.lt.u32.totalorder %s2187_s11, %s2541_s1 }
  0x71   : > { %p1742_p12 = scmp.lt.u32.totalorder %s1740_s25, %s1735_s3  ;;  %p1744_p3 = scmp.lt.u32.totalorder %s1735_s3, %s2187_s11 }
  0x72   : > { %p1738_p4 = pnand %p1737_p13, %p1736_p11 }
  0x73   : > { %p1743_p1 = por %p1742_p12, %p1741_p8 }
  0x74   : > { %p1739_p6 = pneg %p1738_p4 }
  0x75   : > { %p1745_p9 = por %p1744_p3, %p1743_p1 }
  0x77   : > { %p1746_p5 = pnand %p1745_p9, %p1739_p6 }
  0x79   : > { %1749 = shalt.err (!%p1746_p5)
}
  0x7a   : > { %s1750_s16 = scalar_lea.vmem %s2195_s21, 4096  ;;  %s1928_s5 = smov [#allocation6]  }
  0x7b   : > { %p1751_p2 = scmp.ne.s32.totalorder %s2195_s21, %s1750_s16  ;;  %s1755_s9 = sshll.u32 %s1928_s5, 4  ;;  %s1756_s9 = int_to_ptr.vmem [resolvable:$false] %s1755_s9 }
  0x7c   : > { %s1757_s30 = scalar_lea.vmem %s1756_s9, 8192  ;;  %p1758_p11 = scmp.lt.s32.totalorder %s2195_s21, %s1756_s9 }
  0x7d   : > { %p1753_p10 = pnand %p1751_p2, %p1737_p13  ;;  %p1759_p4 = scmp.lt.s32.totalorder %s1757_s30, %s1750_s16 }
  0x7f   : > { %p1754_p7 = pneg %p1753_p10  ;;  %p1760_p8 = por %p1759_p4, %p1758_p11 }
  0x81   : > { %p1761_p12 = pnand %p1760_p8, %p1754_p7 }
  0x83   : > { %1764 = shalt.err (!%p1761_p12)
}
  0x84   : > { %s2593_s12 = smov 8   ;;  %s2594_s24 = smov 128  }
  0x85   : > { %1546 = dma.hbm_to_vmem [thread:$0]  (!%p2191_p0), %s2187_s11, 4096, %s2195_s21, %s2197_s2, %s2594_s24, %s2594_s24, %s2593_s12  }
  0x86   : > { %p2595_p13 = scmp.ne.s32.totalorder %s2582_s10, 0 }
  0x87   : > { %s240_s3 = sand.u32 (!%p2595_p13), 1, %s1895_s22   ;;  %p2596_p6 = scmp.ne.s32.totalorder (!%p2595_p13), %s2575_s6, 0 }
  0x88   : > { %238 = sbr.rel (%p2595_p13) target bundleno = 824 (0x338), region = 36  ;;  %s1271_s15 = sshll.u32 (!%p2595_p13), %s240_s3, 9 }
  0x89   : > { %s241_s14 = scalar_lea.sflag (!%p2595_p13), [#allocation4], %s240_s3  ;;  %s2231_s25 = scalar_lea.vmem (!%p2595_p13), [#allocation3], %s1271_s15 }
  0x8f   : > { %1850 = dma.done.wait (%p2596_p6), %s241_s14, 8192  }
  0x90   : > { %1852 = vsyncadd (%p2596_p6), %s241_s14, 4294959104  ;;  %s2597_s13 = sld [smem:[#allocation18_spill]]  ;;  %s2598_s29 = sld [smem:[#allocation19_spill]] }
  0x91   : > { %s251_s11 = sand.u32 1, %s1883_s19  }
  0x92   : > { %s1272_s21 = sshll.u32 %s251_s11, 8 }
  0x93   : > { %s2239_s2 = scalar_lea.vmem [#allocation6], %s1272_s21 }
  0x96   : > { %s249_s8 = sand.u32 1, %s2597_s13   ;;  %p2599_p0 = scmp.ne.s32.totalorder %s2598_s29, 0 }
  0x97   : > { %s250_s10 = scalar_lea.sflag [#allocation7], %s249_s8 }
  0x98   : > { %1854 = dma.done.wait (%p2599_p0), %s250_s10, 4096  }
  0x99   : > { %1856 = vsyncadd (%p2599_p0), %s250_s10, 4294963200  ;;  %p2600_p1 = scmp.eq.s32.totalorder %s2597_s13, 0 }
  0x9b   : > { %1858 = dma.done.wait (%p2600_p1), [#allocation7], 2048   ;;  %p2601_p3 = pmov %p2600_p1 }
  0x9c   : > { %s2602_s6 = sld [smem:[#allocation15_spill]]  ;;  %s2603_s30 = sld [smem:[#allocation16_spill]] }
  0x9d   : > { %1860 = vsyncadd (%p2601_p3), [#allocation7], 4294965248 }
  0xa2   : > { %s284_s16 = sand.u32 1, %s2602_s6   ;;  %p1275_p9 = scmp.ne.s32.totalorder %s2603_s30, 0 }
  0xa3   : > { %s1274_s5 = sshll.u32 %s284_s16, 8  ;;  %v1929_v0 = vmov (!%p1275_p9), 0.0  }
  0xa4   : > { %s2252_s9 = scalar_lea.vmem [#allocation9], %s1274_s5  ;;  %294 = sbr.rel (%p1275_p9) target bundleno = 180 (0xb4), region = 52  ;;  %295 = vst [vmem:[#allocation2] sm:$0xff] (!%p1275_p9), %v1929_v0  ;;  %296 = vst [vmem:[#allocation2 + $0x8] sm:$0xff] (!%p1275_p9), %v1929_v0 }
  0xa5   : > { %297 = vst [vmem:[#allocation2 + $0x10] sm:$0xff] (!%p1275_p9), %v1929_v0  ;;  %298 = vst [vmem:[#allocation2 + $0x18] sm:$0xff] (!%p1275_p9), %v1929_v0 }
  0xa6   : > { %299 = vst [vmem:[#allocation2 + $0x20] sm:$0xff] (!%p1275_p9), %v1929_v0  ;;  %300 = vst [vmem:[#allocation2 + $0x28] sm:$0xff] (!%p1275_p9), %v1929_v0 }
  0xa7   : > { %301 = vst [vmem:[#allocation2 + $0x30] sm:$0xff] (!%p1275_p9), %v1929_v0  ;;  %302 = vst [vmem:[#allocation2 + $0x38] sm:$0xff] (!%p1275_p9), %v1929_v0 }
  0xa8   : > { %303 = vst [vmem:[#allocation2 + $0x40] sm:$0xff] (!%p1275_p9), %v1929_v0  ;;  %304 = vst [vmem:[#allocation2 + $0x48] sm:$0xff] (!%p1275_p9), %v1929_v0 }
  0xa9   : > { %305 = vst [vmem:[#allocation2 + $0x50] sm:$0xff] (!%p1275_p9), %v1929_v0  ;;  %306 = vst [vmem:[#allocation2 + $0x58] sm:$0xff] (!%p1275_p9), %v1929_v0 }
  0xaa   : > { %307 = vst [vmem:[#allocation2 + $0x60] sm:$0xff] (!%p1275_p9), %v1929_v0  ;;  %308 = vst [vmem:[#allocation2 + $0x68] sm:$0xff] (!%p1275_p9), %v1929_v0 }
  0xab   : > { %309 = vst [vmem:[#allocation2 + $0x70] sm:$0xff] %v1929_v0  ;;  %310 = vst [vmem:[#allocation2 + $0x78] sm:$0xff] %v1929_v0 }
  0xac   : > { %311 = vst [vmem:[#allocation2 + $0x80] sm:$0xff] %v1929_v0  ;;  %312 = vst [vmem:[#allocation2 + $0x88] sm:$0xff] %v1929_v0 }
  0xad   : > { %313 = vst [vmem:[#allocation2 + $0x90] sm:$0xff] %v1929_v0  ;;  %314 = vst [vmem:[#allocation2 + $0x98] sm:$0xff] %v1929_v0 }
  0xae   : > { %315 = vst [vmem:[#allocation2 + $0xa0] sm:$0xff] %v1929_v0  ;;  %316 = vst [vmem:[#allocation2 + $0xa8] sm:$0xff] %v1929_v0 }
  0xaf   : > { %317 = vst [vmem:[#allocation2 + $0xb0] sm:$0xff] %v1929_v0  ;;  %318 = vst [vmem:[#allocation2 + $0xb8] sm:$0xff] %v1929_v0 }
  0xb0   : > { %319 = vst [vmem:[#allocation2 + $0xc0] sm:$0xff] %v1929_v0  ;;  %320 = vst [vmem:[#allocation2 + $0xc8] sm:$0xff] %v1929_v0 }
  0xb1   : > { %321 = vst [vmem:[#allocation2 + $0xd0] sm:$0xff] %v1929_v0  ;;  %322 = vst [vmem:[#allocation2 + $0xd8] sm:$0xff] %v1929_v0 }
  0xb2   : > { %323 = vst [vmem:[#allocation2 + $0xe0] sm:$0xff] %v1929_v0  ;;  %324 = vst [vmem:[#allocation2 + $0xe8] sm:$0xff] %v1929_v0 }
  0xb3   : > { %325 = vst [vmem:[#allocation2 + $0xf0] sm:$0xff] %v1929_v0  ;;  %326 = vst [vmem:[#allocation2 + $0xf8] sm:$0xff] %v1929_v0 }
  0xb4 PF: > { %v359_v1 = vld [vmem:[#allocation8] sm:$0xff]  ;;  %v360_v2 = vld [vmem:[#allocation8 + $0x8] sm:$0xff]  ;;  %v361_v3 = vld [vmem:[#allocation8 + $0x10] sm:$0xff]  ;;  %v1930_v57 = vmov 0.0|0.0   ;;  %s2604_s12 = sld [smem:[#allocation16_spill]] }
  0xb5   : > { %v1414_v4 = vpack.c.bf16 %v360_v2, %v359_v1  ;;  %v362_v5 = vld [vmem:[#allocation8 + $0x18] sm:$0xff]  ;;  %v363_v7 = vld [vmem:[#allocation8 + $0x20] sm:$0xff]  ;;  %v364_v8 = vld [vmem:[#allocation8 + $0x28] sm:$0xff]  ;;  %1494 = vmatprep.subr.bf16.mxu1 %v1930_v57 }
  0xb6   : > { %v1418_v6 = vpack.c.bf16 %v362_v5, %v361_v3  ;;  %v1422_v9 = vpack.c.bf16 %v364_v8, %v363_v7  ;;  %v327_v10 = vld [vmem:[%s2239_s2] sm:$0xff]  ;;  %v365_v11 = vld [vmem:[#allocation8 + $0x30] sm:$0xff]  ;;  %v366_v12 = vld [vmem:[#allocation8 + $0x38] sm:$0xff] }
  0xb7   : > { %1415 = vmatprep.subr.bf16.mxu0 %v1414_v4  ;;  %1366 = vmatprep.mubr.f32.mxu0 %v327_v10  ;;  %v1426_v13 = vpack.c.bf16 %v366_v12, %v365_v11  ;;  %v367_v14 = vld [vmem:[#allocation8 + $0x40] sm:$0xff]  ;;  %v368_v15 = vld [vmem:[#allocation8 + $0x48] sm:$0xff]  ;;  %v369_v17 = vld [vmem:[#allocation8 + $0x50] sm:$0xff] }
  0xb8   : > { %1417 = vmatpush3.bf16.msra.mxu0 %v1414_v4  ;;  %v1430_v16 = vpack.c.bf16 %v368_v15, %v367_v14  ;;  %v370_v18 = vld [vmem:[#allocation8 + $0x58] sm:$0xff]  ;;  %v371_v20 = vld [vmem:[#allocation8 + $0x60] sm:$0xff]  ;;  %v372_v21 = vld [vmem:[#allocation8 + $0x68] sm:$0xff] }
  0xb9   : > { %1419 = vmatprep.subr.bf16.mxu0 %v1418_v6  ;;  %v1434_v19 = vpack.c.bf16 %v370_v18, %v369_v17  ;;  %v1438_v22 = vpack.c.bf16 %v372_v21, %v371_v20  ;;  %v373_v23 = vld [vmem:[#allocation8 + $0x70] sm:$0xff]  ;;  %v374_v24 = vld [vmem:[#allocation8 + $0x78] sm:$0xff]  ;;  %v328_v26 = vld [vmem:[%s2239_s2 + $0x8] sm:$0xff] }
  0xba   : > { %v1442_v25 = vpack.c.bf16 %v374_v24, %v373_v23  ;;  %v329_v27 = vld [vmem:[%s2239_s2 + $0x10] sm:$0xff]  ;;  %v330_v28 = vld [vmem:[%s2239_s2 + $0x18] sm:$0xff]  ;;  %v331_v29 = vld [vmem:[%s2239_s2 + $0x20] sm:$0xff]  ;;  %p1276_p5 = scmp.ne.s32.totalorder %s2604_s12, 1 }
  0xbb   : > { %v332_v30 = vld [vmem:[%s2239_s2 + $0x28] sm:$0xff]  ;;  %v333_v31 = vld [vmem:[%s2239_s2 + $0x30] sm:$0xff]  ;;  %v334_v32 = vld [vmem:[%s2239_s2 + $0x38] sm:$0xff]  ;;  %s2605_s15 = sld [smem:[#allocation25_spill]] (!%p1276_p5) }
  0xbc   : > { %1421 = vmatpush3.bf16.msra.mxu0 %v1418_v6  ;;  %v335_v33 = vld [vmem:[%s2239_s2 + $0x40] sm:$0xff]  ;;  %v336_v34 = vld [vmem:[%s2239_s2 + $0x48] sm:$0xff]  ;;  %v337_v35 = vld [vmem:[%s2239_s2 + $0x50] sm:$0xff] }
  0xbd   : > { %1423 = vmatprep.subr.bf16.mxu0 %v1422_v9  ;;  %v338_v36 = vld [vmem:[%s2239_s2 + $0x58] sm:$0xff]  ;;  %v339_v37 = vld [vmem:[%s2239_s2 + $0x60] sm:$0xff]  ;;  %v340_v38 = vld [vmem:[%s2239_s2 + $0x68] sm:$0xff] }
  0xbe   : > { %v341_v39 = vld [vmem:[%s2239_s2 + $0x70] sm:$0xff]  ;;  %v342_v40 = vld [vmem:[%s2239_s2 + $0x78] sm:$0xff]  ;;  %v343_v41 = vld [vmem:[%s2239_s2 + $0x80] sm:$0xff] }
  0xbf   : > { %v344_v42 = vld [vmem:[%s2239_s2 + $0x88] sm:$0xff]  ;;  %v345_v43 = vld [vmem:[%s2239_s2 + $0x90] sm:$0xff]  ;;  %v346_v44 = vld [vmem:[%s2239_s2 + $0x98] sm:$0xff] }
  0xc0   : > { %1425 = vmatpush3.bf16.msra.mxu0 %v1422_v9  ;;  %v347_v45 = vld [vmem:[%s2239_s2 + $0xa0] sm:$0xff]  ;;  %v348_v46 = vld [vmem:[%s2239_s2 + $0xa8] sm:$0xff]  ;;  %v349_v47 = vld [vmem:[%s2239_s2 + $0xb0] sm:$0xff] }
  0xc1   : > { %1427 = vmatprep.subr.bf16.mxu0 %v1426_v13  ;;  %v350_v48 = vld [vmem:[%s2239_s2 + $0xb8] sm:$0xff]  ;;  %v351_v49 = vld [vmem:[%s2239_s2 + $0xc0] sm:$0xff]  ;;  %v352_v50 = vld [vmem:[%s2239_s2 + $0xc8] sm:$0xff] }
  0xc2   : > { %v353_v51 = vld [vmem:[%s2239_s2 + $0xd0] sm:$0xff]  ;;  %v354_v52 = vld [vmem:[%s2239_s2 + $0xd8] sm:$0xff]  ;;  %v355_v53 = vld [vmem:[%s2239_s2 + $0xe0] sm:$0xff] }
  0xc3   : > { %v356_v54 = vld [vmem:[%s2239_s2 + $0xe8] sm:$0xff]  ;;  %v357_v55 = vld [vmem:[%s2239_s2 + $0xf0] sm:$0xff]  ;;  %v358_v56 = vld [vmem:[%s2239_s2 + $0xf8] sm:$0xff] }
  0xc4   : > { %1429 = vmatpush3.bf16.msra.mxu0 %v1426_v13  ;;  %v657_v58 = vld [vmem:[%s2231_s25 + $0xc8] sm:$0xff] }
  0xc5   : > { %1431 = vmatprep.subr.bf16.mxu0 %v1430_v16  ;;  %820 = vmatprep.mubr.f32.mxu1 %v657_v58  ;;  %v633_v59 = vld [vmem:[%s2231_s25 + $0x8] sm:$0xff] }
  0xc6   : > { %v665_v58 = vld [vmem:[%s2231_s25 + $0x108] sm:$0xff] }
  0xc8   : > { %1433 = vmatpush3.bf16.msra.mxu0 %v1430_v16 }
  0xc9   : > { %1435 = vmatprep.subr.bf16.mxu0 %v1434_v19 }
  0xcc   : > { %1437 = vmatpush3.bf16.msra.mxu0 %v1434_v19 }
  0xcd   : > { %1439 = vmatprep.subr.bf16.mxu0 %v1438_v22 }
  0xd0   : > { %1441 = vmatpush3.bf16.msra.mxu0 %v1438_v22 }
  0xd1   : > { %1443 = vmatprep.subr.bf16.mxu0 %v1442_v25 }
  0xd4   : > { %1445 = vmatpush3.bf16.msra.mxu0 %v1442_v25 }
  0xd5   : > { %1446 = vmatprep.subr.bf16.mxu0 %v1930_v57 }
  0xd7   : > { %1367 = vmatmul.mubr.f32.vlgmr.msra.gmra.mrb[0].mxu0 %v328_v26 }
  0xd8   : > { %1369 = vmatprep.mubr.f32.mxu0 %v329_v27 }
  0xdb   : > { %1370 = vmatmul.mubr.f32.gmra.mrb[2].mxu0 %v330_v28 }
  0xdc   : > { %1372 = vmatprep.mubr.f32.mxu0 %v331_v29 }
  0xdf   : > { %1373 = vmatmul.mubr.f32.gmra.mrb[4].mxu0 %v332_v30 }
  0xe0   : > { %1375 = vmatprep.mubr.f32.mxu0 %v333_v31 }
  0xe3   : > { %1376 = vmatmul.mubr.f32.gmra.mrb[6].mxu0 %v334_v32 }
  0xe4   : > { %1378 = vmatprep.mubr.f32.mxu0 %v335_v33 }
  0xe7   : > { %1379 = vmatmul.mubr.f32.gmra.mrb[8].mxu0 %v336_v34 }
  0xe8   : > { %1381 = vmatprep.mubr.f32.mxu0 %v337_v35 }
  0xeb   : > { %1382 = vmatmul.mubr.f32.gmra.mrb[10].mxu0 %v338_v36 }
  0xec   : > { %1384 = vmatprep.mubr.f32.mxu0 %v339_v37 }
  0xef   : > { %1385 = vmatmul.mubr.f32.gmra.mrb[12].mxu0 %v340_v38 }
  0xf0   : > { %1387 = vmatprep.mubr.f32.mxu0 %v341_v39 }
  0xf3   : > { %1388 = vmatmul.mubr.f32.gmra.mrb[14].mxu0 %v342_v40 }
  0xf4   : > { %1390 = vmatprep.mubr.f32.mxu0 %v343_v41 }
  0xf7   : > { %1391 = vmatmul.mubr.f32.gmra.mrb[16].mxu0 %v344_v42 }
  0xf8   : > { %1393 = vmatprep.mubr.f32.mxu0 %v345_v43 }
  0xfb   : > { %1394 = vmatmul.mubr.f32.gmra.mrb[18].mxu0 %v346_v44  ;;  %v656_v44 = vld [vmem:[%s2231_s25 + $0xc0] sm:$0xff] }
  0xfc   : > { %1396 = vmatprep.mubr.f32.mxu0 %v347_v45  ;;  %v632_v45 = vld [vmem:[%s2231_s25] sm:$0xff] }
  0xff   : > { %1397 = vmatmul.mubr.f32.gmra.mrb[20].mxu0 %v348_v46  ;;  %v659_v46 = vld [vmem:[%s2231_s25 + $0xd8] sm:$0xff] }
 0x100   : > { %1399 = vmatprep.mubr.f32.mxu0 %v349_v47  ;;  %v635_v47 = vld [vmem:[%s2231_s25 + $0x18] sm:$0xff] }
 0x103   : > { %1400 = vmatmul.mubr.f32.gmra.mrb[22].mxu0 %v350_v48  ;;  %v658_v48 = vld [vmem:[%s2231_s25 + $0xd0] sm:$0xff] }
 0x104   : > { %1402 = vmatprep.mubr.f32.mxu0 %v351_v49  ;;  %v634_v49 = vld [vmem:[%s2231_s25 + $0x10] sm:$0xff] }
 0x107   : > { %1403 = vmatmul.mubr.f32.gmra.mrb[24].mxu0 %v352_v50  ;;  %v661_v50 = vld [vmem:[%s2231_s25 + $0xe8] sm:$0xff] }
 0x108   : > { %1405 = vmatprep.mubr.f32.mxu0 %v353_v51  ;;  %v637_v51 = vld [vmem:[%s2231_s25 + $0x28] sm:$0xff] }
 0x10b   : > { %1406 = vmatmul.mubr.f32.gmra.mrb[26].mxu0 %v354_v52  ;;  %v660_v52 = vld [vmem:[%s2231_s25 + $0xe0] sm:$0xff] }
 0x10c   : > { %1408 = vmatprep.mubr.f32.mxu0 %v355_v53  ;;  %v636_v53 = vld [vmem:[%s2231_s25 + $0x20] sm:$0xff] }
 0x10f   : > { %1409 = vmatmul.mubr.f32.gmra.mrb[28].mxu0 %v356_v54  ;;  %v663_v54 = vld [vmem:[%s2231_s25 + $0xf8] sm:$0xff] }
 0x110   : > { %1411 = vmatprep.mubr.f32.mxu0 %v357_v55  ;;  %v639_v55 = vld [vmem:[%s2231_s25 + $0x38] sm:$0xff] }
 0x113   : > { %1412 = vmatmul.mubr.f32.gmra.mrb[30].mxu0 %v358_v56  ;;  %v662_v56 = vld [vmem:[%s2231_s25 + $0xf0] sm:$0xff] }
 0x114   : > { %760 = vmatprep.mubr.f32.mxu0 %v633_v59  ;;  %v641_v59 = vld [vmem:[%s2231_s25 + $0x48] sm:$0xff] }
 0x1aa   : > { %v1368_v60 = vpop.f32.mrb[0].mxu0 }
 0x1ab   : > { %v441_v61 = vpop.f32.mrb[1].mxu0 }
 0x1ac   : > { %v1447_v62 = vpack.c.bf16 %v1368_v60, %v441_v61  ;;  %v664_v60 = vld [vmem:[%s2231_s25 + $0x100] sm:$0xff] }
 0x1ad   : > { %v640_v61 = vld [vmem:[%s2231_s25 + $0x40] sm:$0xff] }
 0x1ae   : > { %v1371_v63 = vpop.f32.mrb[2].mxu0  ;;  %1448 = vmatpush1.bf16.msra.mxu0 %v1447_v62  ;;  %1510 = vmatpush1.bf16.msra.mxu1 %v1447_v62  ;;  %v667_v62 = vld [vmem:[%s2231_s25 + $0x118] sm:$0xff] }
 0x1af   : > { %v451_v0 = vpop.f32.mrb[3].mxu0  ;;  %1449 = vmatprep.subr.bf16.mxu0 %v1930_v57  ;;  %1495 = vmatprep.subr.bf16.mxu1 %v1930_v57 }
 0x1b0   : > { %v1450_v1 = vpack.c.bf16 %v1371_v63, %v451_v0  ;;  %v643_v63 = vld [vmem:[%s2231_s25 + $0x58] sm:$0xff]  ;;  %v666_v0 = vld [vmem:[%s2231_s25 + $0x110] sm:$0xff] }
 0x1b2   : > { %v1374_v2 = vpop.f32.mrb[4].mxu0  ;;  %1451 = vmatpush1.bf16.msra.mxu0 %v1450_v1  ;;  %1511 = vmatpush1.bf16.msra.mxu1 %v1450_v1  ;;  %v642_v1 = vld [vmem:[%s2231_s25 + $0x50] sm:$0xff] }
 0x1b3   : > { %v461_v3 = vpop.f32.mrb[5].mxu0  ;;  %1452 = vmatprep.subr.bf16.mxu0 %v1930_v57  ;;  %1496 = vmatprep.subr.bf16.mxu1 %v1930_v57 }
 0x1b4   : > { %v1453_v4 = vpack.c.bf16 %v1374_v2, %v461_v3  ;;  %v669_v2 = vld [vmem:[%s2231_s25 + $0x128] sm:$0xff] }
 0x1b5   : > { %v645_v3 = vld [vmem:[%s2231_s25 + $0x68] sm:$0xff] }
 0x1b6   : > { %v1377_v5 = vpop.f32.mrb[6].mxu0  ;;  %1454 = vmatpush1.bf16.msra.mxu0 %v1453_v4  ;;  %1512 = vmatpush1.bf16.msra.mxu1 %v1453_v4  ;;  %v668_v4 = vld [vmem:[%s2231_s25 + $0x120] sm:$0xff] }
 0x1b7   : > { %v471_v6 = vpop.f32.mrb[7].mxu0  ;;  %1455 = vmatprep.subr.bf16.mxu0 %v1930_v57  ;;  %1497 = vmatprep.subr.bf16.mxu1 %v1930_v57 }
 0x1b8   : > { %v1456_v7 = vpack.c.bf16 %v1377_v5, %v471_v6  ;;  %v644_v5 = vld [vmem:[%s2231_s25 + $0x60] sm:$0xff]  ;;  %v671_v6 = vld [vmem:[%s2231_s25 + $0x138] sm:$0xff] }
 0x1ba   : > { %v1380_v8 = vpop.f32.mrb[8].mxu0  ;;  %1457 = vmatpush1.bf16.msra.mxu0 %v1456_v7  ;;  %1513 = vmatpush1.bf16.msra.mxu1 %v1456_v7  ;;  %v647_v7 = vld [vmem:[%s2231_s25 + $0x78] sm:$0xff] }
 0x1bb   : > { %v481_v9 = vpop.f32.mrb[9].mxu0  ;;  %1458 = vmatprep.subr.bf16.mxu0 %v1930_v57  ;;  %1498 = vmatprep.subr.bf16.mxu1 %v1930_v57 }
 0x1bc   : > { %v1459_v10 = vpack.c.bf16 %v1380_v8, %v481_v9  ;;  %v670_v8 = vld [vmem:[%s2231_s25 + $0x130] sm:$0xff] }
 0x1bd   : > { %v646_v9 = vld [vmem:[%s2231_s25 + $0x70] sm:$0xff] }
 0x1be   : > { %v1383_v11 = vpop.f32.mrb[10].mxu0  ;;  %1460 = vmatpush1.bf16.msra.mxu0 %v1459_v10  ;;  %1514 = vmatpush1.bf16.msra.mxu1 %v1459_v10  ;;  %v673_v10 = vld [vmem:[%s2231_s25 + $0x148] sm:$0xff] }
 0x1bf   : > { %v491_v12 = vpop.f32.mrb[11].mxu0  ;;  %1461 = vmatprep.subr.bf16.mxu0 %v1930_v57  ;;  %1499 = vmatprep.subr.bf16.mxu1 %v1930_v57 }
 0x1c0   : > { %v1462_v13 = vpack.c.bf16 %v1383_v11, %v491_v12  ;;  %v649_v11 = vld [vmem:[%s2231_s25 + $0x88] sm:$0xff]  ;;  %v672_v12 = vld [vmem:[%s2231_s25 + $0x140] sm:$0xff] }
 0x1c2   : > { %v1386_v14 = vpop.f32.mrb[12].mxu0  ;;  %1463 = vmatpush1.bf16.msra.mxu0 %v1462_v13  ;;  %1515 = vmatpush1.bf16.msra.mxu1 %v1462_v13  ;;  %v648_v13 = vld [vmem:[%s2231_s25 + $0x80] sm:$0xff] }
 0x1c3   : > { %v501_v15 = vpop.f32.mrb[13].mxu0  ;;  %1464 = vmatprep.subr.bf16.mxu0 %v1930_v57  ;;  %1500 = vmatprep.subr.bf16.mxu1 %v1930_v57 }
 0x1c4   : > { %v1465_v16 = vpack.c.bf16 %v1386_v14, %v501_v15  ;;  %v675_v14 = vld [vmem:[%s2231_s25 + $0x158] sm:$0xff] }
 0x1c5   : > { %v651_v15 = vld [vmem:[%s2231_s25 + $0x98] sm:$0xff] }
 0x1c6   : > { %v1389_v17 = vpop.f32.mrb[14].mxu0  ;;  %1466 = vmatpush1.bf16.msra.mxu0 %v1465_v16  ;;  %1516 = vmatpush1.bf16.msra.mxu1 %v1465_v16  ;;  %v674_v16 = vld [vmem:[%s2231_s25 + $0x150] sm:$0xff] }
 0x1c7   : > { %v511_v18 = vpop.f32.mrb[15].mxu0  ;;  %1467 = vmatprep.subr.bf16.mxu0 %v1930_v57  ;;  %1501 = vmatprep.subr.bf16.mxu1 %v1930_v57 }
 0x1c8   : > { %v1468_v19 = vpack.c.bf16 %v1389_v17, %v511_v18  ;;  %v650_v17 = vld [vmem:[%s2231_s25 + $0x90] sm:$0xff]  ;;  %v677_v18 = vld [vmem:[%s2231_s25 + $0x168] sm:$0xff] }
 0x1ca   : > { %v1392_v20 = vpop.f32.mrb[16].mxu0  ;;  %1469 = vmatpush1.bf16.msra.mxu0 %v1468_v19  ;;  %1517 = vmatpush1.bf16.msra.mxu1 %v1468_v19  ;;  %v653_v19 = vld [vmem:[%s2231_s25 + $0xa8] sm:$0xff] }
 0x1cb   : > { %v521_v21 = vpop.f32.mrb[17].mxu0  ;;  %1470 = vmatprep.subr.bf16.mxu0 %v1930_v57  ;;  %1502 = vmatprep.subr.bf16.mxu1 %v1930_v57 }
 0x1cc   : > { %v1471_v22 = vpack.c.bf16 %v1392_v20, %v521_v21  ;;  %v676_v20 = vld [vmem:[%s2231_s25 + $0x160] sm:$0xff] }
 0x1cd   : > { %v652_v21 = vld [vmem:[%s2231_s25 + $0xa0] sm:$0xff] }
 0x1ce   : > { %v1395_v23 = vpop.f32.mrb[18].mxu0  ;;  %1472 = vmatpush1.bf16.msra.mxu0 %v1471_v22  ;;  %1518 = vmatpush1.bf16.msra.mxu1 %v1471_v22  ;;  %v679_v22 = vld [vmem:[%s2231_s25 + $0x178] sm:$0xff] }
 0x1cf   : > { %v531_v24 = vpop.f32.mrb[19].mxu0  ;;  %1473 = vmatprep.subr.bf16.mxu0 %v1930_v57  ;;  %1503 = vmatprep.subr.bf16.mxu1 %v1930_v57 }
 0x1d0   : > { %v1474_v25 = vpack.c.bf16 %v1395_v23, %v531_v24  ;;  %v655_v23 = vld [vmem:[%s2231_s25 + $0xb8] sm:$0xff]  ;;  %v678_v24 = vld [vmem:[%s2231_s25 + $0x170] sm:$0xff] }
 0x1d2   : > { %v1398_v26 = vpop.f32.mrb[20].mxu0  ;;  %1475 = vmatpush1.bf16.msra.mxu0 %v1474_v25  ;;  %1519 = vmatpush1.bf16.msra.mxu1 %v1474_v25  ;;  %v654_v25 = vld [vmem:[%s2231_s25 + $0xb0] sm:$0xff] }
 0x1d3   : > { %v541_v27 = vpop.f32.mrb[21].mxu0  ;;  %1476 = vmatprep.subr.bf16.mxu0 %v1930_v57  ;;  %1504 = vmatprep.subr.bf16.mxu1 %v1930_v57 }
 0x1d4   : > { %v1477_v28 = vpack.c.bf16 %v1398_v26, %v541_v27  ;;  %v681_v26 = vld [vmem:[%s2231_s25 + $0x188] sm:$0xff]  ;;  %v680_v27 = vld [vmem:[%s2231_s25 + $0x180] sm:$0xff] }
 0x1d6   : > { %v1401_v29 = vpop.f32.mrb[22].mxu0  ;;  %1478 = vmatpush1.bf16.msra.mxu0 %v1477_v28  ;;  %1520 = vmatpush1.bf16.msra.mxu1 %v1477_v28  ;;  %v683_v28 = vld [vmem:[%s2231_s25 + $0x198] sm:$0xff] }
 0x1d7   : > { %v551_v30 = vpop.f32.mrb[23].mxu0  ;;  %1479 = vmatprep.subr.bf16.mxu0 %v1930_v57  ;;  %1505 = vmatprep.subr.bf16.mxu1 %v1930_v57 }
 0x1d8   : > { %v1480_v31 = vpack.c.bf16 %v1401_v29, %v551_v30  ;;  %v682_v29 = vld [vmem:[%s2231_s25 + $0x190] sm:$0xff]  ;;  %v685_v30 = vld [vmem:[%s2231_s25 + $0x1a8] sm:$0xff] }
 0x1da   : > { %v1404_v32 = vpop.f32.mrb[24].mxu0  ;;  %1481 = vmatpush1.bf16.msra.mxu0 %v1480_v31  ;;  %1521 = vmatpush1.bf16.msra.mxu1 %v1480_v31  ;;  %v684_v31 = vld [vmem:[%s2231_s25 + $0x1a0] sm:$0xff] }
 0x1db   : > { %v561_v33 = vpop.f32.mrb[25].mxu0  ;;  %1482 = vmatprep.subr.bf16.mxu0 %v1930_v57  ;;  %1506 = vmatprep.subr.bf16.mxu1 %v1930_v57 }
 0x1dc   : > { %v1483_v34 = vpack.c.bf16 %v1404_v32, %v561_v33  ;;  %v687_v32 = vld [vmem:[%s2231_s25 + $0x1b8] sm:$0xff]  ;;  %v686_v33 = vld [vmem:[%s2231_s25 + $0x1b0] sm:$0xff] }
 0x1de   : > { %v1407_v35 = vpop.f32.mrb[26].mxu0  ;;  %1484 = vmatpush1.bf16.msra.mxu0 %v1483_v34  ;;  %1522 = vmatpush1.bf16.msra.mxu1 %v1483_v34  ;;  %v689_v34 = vld [vmem:[%s2231_s25 + $0x1c8] sm:$0xff] }
 0x1df   : > { %v571_v36 = vpop.f32.mrb[27].mxu0  ;;  %1485 = vmatprep.subr.bf16.mxu0 %v1930_v57  ;;  %1507 = vmatprep.subr.bf16.mxu1 %v1930_v57 }
 0x1e0   : > { %v1486_v37 = vpack.c.bf16 %v1407_v35, %v571_v36  ;;  %v688_v35 = vld [vmem:[%s2231_s25 + $0x1c0] sm:$0xff]  ;;  %v691_v36 = vld [vmem:[%s2231_s25 + $0x1d8] sm:$0xff] }
 0x1e2   : > { %v1410_v38 = vpop.f32.mrb[28].mxu0  ;;  %1487 = vmatpush1.bf16.msra.mxu0 %v1486_v37  ;;  %1523 = vmatpush1.bf16.msra.mxu1 %v1486_v37  ;;  %v690_v37 = vld [vmem:[%s2231_s25 + $0x1d0] sm:$0xff] }
 0x1e3   : > { %v581_v39 = vpop.f32.mrb[29].mxu0  ;;  %1488 = vmatprep.subr.bf16.mxu0 %v1930_v57  ;;  %1508 = vmatprep.subr.bf16.mxu1 %v1930_v57 }
 0x1e4   : > { %v1489_v40 = vpack.c.bf16 %v1410_v38, %v581_v39  ;;  %v693_v38 = vld [vmem:[%s2231_s25 + $0x1e8] sm:$0xff]  ;;  %v692_v39 = vld [vmem:[%s2231_s25 + $0x1e0] sm:$0xff] }
 0x1e6   : > { %v1413_v41 = vpop.f32.mrb[30].mxu0  ;;  %1490 = vmatpush1.bf16.msra.mxu0 %v1489_v40  ;;  %1524 = vmatpush1.bf16.msra.mxu1 %v1489_v40  ;;  %v695_v40 = vld [vmem:[%s2231_s25 + $0x1f8] sm:$0xff] }
 0x1e7   : > { %v591_v42 = vpop.f32.mrb[31].mxu0  ;;  %1491 = vmatprep.subr.bf16.mxu0 %v1930_v57  ;;  %1509 = vmatprep.subr.bf16.mxu1 %v1930_v57  ;;  %v638_v57 = vld [vmem:[%s2231_s25 + $0x30] sm:$0xff] }
 0x1e8   : > { %v1492_v43 = vpack.c.bf16 %v1413_v41, %v591_v42  ;;  %v694_v41 = vld [vmem:[%s2231_s25 + $0x1f0] sm:$0xff]  ;;  %v612_v42 = vld [vmem:[#allocation2 + $0x60] sm:$0xff] }
 0x1ea   : > { %1493 = vmatpush1.bf16.msra.mxu0 %v1492_v43  ;;  %1525 = vmatpush1.bf16.msra.mxu1 %v1492_v43  ;;  %v600_v43 = vld [vmem:[#allocation2] sm:$0xff] }
 0x1ed   : > { %821 = vmatmul.mubr.f32.vlgmr.msra.gmra.mrb[0].mxu1 %v656_v44  ;;  %761 = vmatmul.mubr.f32.vlgmr.msra.gmra.mrb[32].mxu0 %v632_v45 }
 0x1ee   : > { %825 = vmatprep.mubr.f32.mxu1 %v659_v46  ;;  %765 = vmatprep.mubr.f32.mxu0 %v635_v47 }
 0x1f1   : > { %826 = vmatmul.mubr.f32.gmra.mrb[2].mxu1 %v658_v48  ;;  %766 = vmatmul.mubr.f32.gmra.mrb[34].mxu0 %v634_v49 }
 0x1f2   : > { %830 = vmatprep.mubr.f32.mxu1 %v661_v50  ;;  %770 = vmatprep.mubr.f32.mxu0 %v637_v51  ;;  %v613_v50 = vld [vmem:[#allocation2 + $0x68] sm:$0xff] }
 0x1f3   : > { %v601_v51 = vld [vmem:[#allocation2 + $0x8] sm:$0xff] }
 0x1f5   : > { %831 = vmatmul.mubr.f32.gmra.mrb[4].mxu1 %v660_v52  ;;  %771 = vmatmul.mubr.f32.gmra.mrb[36].mxu0 %v636_v53 }
 0x1f6   : > { %835 = vmatprep.mubr.f32.mxu1 %v663_v54  ;;  %775 = vmatprep.mubr.f32.mxu0 %v639_v55 }
 0x1f9   : > { %836 = vmatmul.mubr.f32.gmra.mrb[6].mxu1 %v662_v56  ;;  %776 = vmatmul.mubr.f32.gmra.mrb[38].mxu0 %v638_v57 }
 0x1fa   : > { %840 = vmatprep.mubr.f32.mxu1 %v665_v58  ;;  %780 = vmatprep.mubr.f32.mxu0 %v641_v59  ;;  %v614_v58 = vld [vmem:[#allocation2 + $0x70] sm:$0xff] }
 0x1fb   : > { %v602_v59 = vld [vmem:[#allocation2 + $0x10] sm:$0xff] }
 0x1fd   : > { %841 = vmatmul.mubr.f32.gmra.mrb[8].mxu1 %v664_v60  ;;  %781 = vmatmul.mubr.f32.gmra.mrb[40].mxu0 %v640_v61 }
 0x1fe   : > { %845 = vmatprep.mubr.f32.mxu1 %v667_v62  ;;  %785 = vmatprep.mubr.f32.mxu0 %v643_v63 }
 0x201   : > { %846 = vmatmul.mubr.f32.gmra.mrb[10].mxu1 %v666_v0  ;;  %786 = vmatmul.mubr.f32.gmra.mrb[42].mxu0 %v642_v1 }
 0x202   : > { %850 = vmatprep.mubr.f32.mxu1 %v669_v2  ;;  %790 = vmatprep.mubr.f32.mxu0 %v645_v3  ;;  %v615_v2 = vld [vmem:[#allocation2 + $0x78] sm:$0xff] }
 0x203   : > { %v603_v3 = vld [vmem:[#allocation2 + $0x18] sm:$0xff] }
 0x205   : > { %851 = vmatmul.mubr.f32.gmra.mrb[12].mxu1 %v668_v4  ;;  %791 = vmatmul.mubr.f32.gmra.mrb[44].mxu0 %v644_v5 }
 0x206   : > { %855 = vmatprep.mubr.f32.mxu1 %v671_v6  ;;  %795 = vmatprep.mubr.f32.mxu0 %v647_v7 }
 0x209   : > { %856 = vmatmul.mubr.f32.gmra.mrb[14].mxu1 %v670_v8  ;;  %796 = vmatmul.mubr.f32.gmra.mrb[46].mxu0 %v646_v9 }
 0x20a   : > { %860 = vmatprep.mubr.f32.mxu1 %v673_v10  ;;  %800 = vmatprep.mubr.f32.mxu0 %v649_v11  ;;  %v616_v10 = vld [vmem:[#allocation2 + $0x80] sm:$0xff] }
 0x20b   : > { %v604_v11 = vld [vmem:[#allocation2 + $0x20] sm:$0xff] }
 0x20d   : > { %861 = vmatmul.mubr.f32.gmra.mrb[16].mxu1 %v672_v12  ;;  %801 = vmatmul.mubr.f32.gmra.mrb[48].mxu0 %v648_v13 }
 0x20e   : > { %865 = vmatprep.mubr.f32.mxu1 %v675_v14  ;;  %805 = vmatprep.mubr.f32.mxu0 %v651_v15 }
 0x211   : > { %866 = vmatmul.mubr.f32.gmra.mrb[18].mxu1 %v674_v16  ;;  %806 = vmatmul.mubr.f32.gmra.mrb[50].mxu0 %v650_v17 }
 0x212   : > { %870 = vmatprep.mubr.f32.mxu1 %v677_v18  ;;  %810 = vmatprep.mubr.f32.mxu0 %v653_v19  ;;  %v617_v18 = vld [vmem:[#allocation2 + $0x88] sm:$0xff] }
 0x213   : > { %v605_v19 = vld [vmem:[#allocation2 + $0x28] sm:$0xff] }
 0x215   : > { %871 = vmatmul.mubr.f32.gmra.mrb[20].mxu1 %v676_v20  ;;  %811 = vmatmul.mubr.f32.gmra.mrb[52].mxu0 %v652_v21 }
 0x216   : > { %875 = vmatprep.mubr.f32.mxu1 %v679_v22  ;;  %815 = vmatprep.mubr.f32.mxu0 %v655_v23 }
 0x219   : > { %876 = vmatmul.mubr.f32.gmra.mrb[22].mxu1 %v678_v24  ;;  %816 = vmatmul.mubr.f32.gmra.mrb[54].mxu0 %v654_v25 }
 0x21a   : > { %880 = vmatprep.mubr.f32.mxu1 %v681_v26  ;;  %v618_v26 = vld [vmem:[#allocation2 + $0x90] sm:$0xff] }
 0x21d   : > { %881 = vmatmul.mubr.f32.gmra.mrb[24].mxu1 %v680_v27  ;;  %v606_v27 = vld [vmem:[#allocation2 + $0x30] sm:$0xff] }
 0x21e   : > { %885 = vmatprep.mubr.f32.mxu1 %v683_v28 }
 0x221   : > { %886 = vmatmul.mubr.f32.gmra.mrb[26].mxu1 %v682_v29 }
 0x222   : > { %890 = vmatprep.mubr.f32.mxu1 %v685_v30 }
 0x225   : > { %891 = vmatmul.mubr.f32.gmra.mrb[28].mxu1 %v684_v31 }
 0x226   : > { %895 = vmatprep.mubr.f32.mxu1 %v687_v32 }
 0x229   : > { %896 = vmatmul.mubr.f32.gmra.mrb[30].mxu1 %v686_v33 }
 0x22a   : > { %900 = vmatprep.mubr.f32.mxu1 %v689_v34  ;;  %v619_v34 = vld [vmem:[#allocation2 + $0x98] sm:$0xff] }
 0x22d   : > { %901 = vmatmul.mubr.f32.gmra.mrb[32].mxu1 %v688_v35  ;;  %v607_v35 = vld [vmem:[#allocation2 + $0x38] sm:$0xff] }
 0x22e   : > { %905 = vmatprep.mubr.f32.mxu1 %v691_v36 }
 0x231   : > { %906 = vmatmul.mubr.f32.gmra.mrb[34].mxu1 %v690_v37 }
 0x232   : > { %910 = vmatprep.mubr.f32.mxu1 %v693_v38 }
 0x235   : > { %911 = vmatmul.mubr.f32.gmra.mrb[36].mxu1 %v692_v39 }
 0x236   : > { %915 = vmatprep.mubr.f32.mxu1 %v695_v40 }
 0x239   : > { %916 = vmatmul.mubr.f32.gmra.mrb[38].mxu1 %v694_v41 }
 0x2c0   : > { %v822_v44 = vpop.f32.mrb[0].mxu1  ;;  %v762_v45 = vpop.f32.mrb[32].mxu0 }
 0x2c1   : > { %v933_v46 = vadd.f32 %v822_v44, %v612_v42  ;;  %v824_v47 = vpop.f32.mrb[1].mxu1  ;;  %v921_v48 = vadd.f32 %v762_v45, %v600_v43  ;;  %v764_v49 = vpop.f32.mrb[33].mxu0  ;;  %v620_v42 = vld [vmem:[#allocation2 + $0xa0] sm:$0xff] }
 0x2c2   : > { %v608_v43 = vld [vmem:[#allocation2 + $0x40] sm:$0xff] }
 0x2c3   : > { %965 = vst [vmem:[#allocation2 + $0x60] sm:$0xff] %v933_v46  ;;  %953 = vst [vmem:[#allocation2] sm:$0xff] %v921_v48 }
 0x2c4   : > { %v827_v52 = vpop.f32.mrb[2].mxu1  ;;  %v767_v53 = vpop.f32.mrb[34].mxu0 }
 0x2c5   : > { %v934_v54 = vadd.f32 %v827_v52, %v613_v50  ;;  %v829_v55 = vpop.f32.mrb[3].mxu1  ;;  %v922_v56 = vadd.f32 %v767_v53, %v601_v51  ;;  %v769_v57 = vpop.f32.mrb[35].mxu0  ;;  %v621_v50 = vld [vmem:[#allocation2 + $0xa8] sm:$0xff] }
 0x2c6   : > { %v609_v51 = vld [vmem:[#allocation2 + $0x48] sm:$0xff] }
 0x2c7   : > { %966 = vst [vmem:[#allocation2 + $0x68] sm:$0xff] %v934_v54  ;;  %954 = vst [vmem:[#allocation2 + $0x8] sm:$0xff] %v922_v56 }
 0x2c8   : > { %v832_v60 = vpop.f32.mrb[4].mxu1  ;;  %v772_v61 = vpop.f32.mrb[36].mxu0 }
 0x2c9   : > { %v935_v62 = vadd.f32 %v832_v60, %v614_v58  ;;  %v834_v63 = vpop.f32.mrb[5].mxu1  ;;  %v923_v0 = vadd.f32 %v772_v61, %v602_v59  ;;  %v774_v1 = vpop.f32.mrb[37].mxu0  ;;  %v622_v58 = vld [vmem:[#allocation2 + $0xb0] sm:$0xff] }
 0x2ca   : > { %v610_v59 = vld [vmem:[#allocation2 + $0x50] sm:$0xff] }
 0x2cb   : > { %967 = vst [vmem:[#allocation2 + $0x70] sm:$0xff] %v935_v62  ;;  %955 = vst [vmem:[#allocation2 + $0x10] sm:$0xff] %v923_v0 }
 0x2cc   : > { %v837_v4 = vpop.f32.mrb[6].mxu1  ;;  %v777_v5 = vpop.f32.mrb[38].mxu0 }
 0x2cd   : > { %v936_v6 = vadd.f32 %v837_v4, %v615_v2  ;;  %v839_v7 = vpop.f32.mrb[7].mxu1  ;;  %v924_v8 = vadd.f32 %v777_v5, %v603_v3  ;;  %v779_v9 = vpop.f32.mrb[39].mxu0  ;;  %v623_v2 = vld [vmem:[#allocation2 + $0xb8] sm:$0xff] }
 0x2ce   : > { %v611_v3 = vld [vmem:[#allocation2 + $0x58] sm:$0xff] }
 0x2cf   : > { %968 = vst [vmem:[#allocation2 + $0x78] sm:$0xff] %v936_v6  ;;  %956 = vst [vmem:[#allocation2 + $0x18] sm:$0xff] %v924_v8 }
 0x2d0   : > { %v842_v12 = vpop.f32.mrb[8].mxu1  ;;  %v782_v13 = vpop.f32.mrb[40].mxu0 }
 0x2d1   : > { %v937_v14 = vadd.f32 %v842_v12, %v616_v10  ;;  %v844_v15 = vpop.f32.mrb[9].mxu1  ;;  %v925_v16 = vadd.f32 %v782_v13, %v604_v11  ;;  %v784_v17 = vpop.f32.mrb[41].mxu0  ;;  %v624_v10 = vld [vmem:[#allocation2 + $0xc0] sm:$0xff] }
 0x2d3   : > { %969 = vst [vmem:[#allocation2 + $0x80] sm:$0xff] %v937_v14  ;;  %957 = vst [vmem:[#allocation2 + $0x20] sm:$0xff] %v925_v16  ;;  %v625_v14 = vld [vmem:[#allocation2 + $0xc8] sm:$0xff] }
 0x2d4   : > { %v847_v20 = vpop.f32.mrb[10].mxu1  ;;  %v787_v21 = vpop.f32.mrb[42].mxu0 }
 0x2d5   : > { %v938_v22 = vadd.f32 %v847_v20, %v617_v18  ;;  %v849_v23 = vpop.f32.mrb[11].mxu1  ;;  %v926_v24 = vadd.f32 %v787_v21, %v605_v19  ;;  %v789_v25 = vpop.f32.mrb[43].mxu0  ;;  %v626_v18 = vld [vmem:[#allocation2 + $0xd0] sm:$0xff] }
 0x2d7   : > { %970 = vst [vmem:[#allocation2 + $0x88] sm:$0xff] %v938_v22  ;;  %958 = vst [vmem:[#allocation2 + $0x28] sm:$0xff] %v926_v24  ;;  %v627_v22 = vld [vmem:[#allocation2 + $0xd8] sm:$0xff] }
 0x2d8   : > { %v852_v28 = vpop.f32.mrb[12].mxu1  ;;  %v792_v29 = vpop.f32.mrb[44].mxu0 }
 0x2d9   : > { %v939_v30 = vadd.f32 %v852_v28, %v618_v26  ;;  %v854_v31 = vpop.f32.mrb[13].mxu1  ;;  %v927_v32 = vadd.f32 %v792_v29, %v606_v27  ;;  %v794_v33 = vpop.f32.mrb[45].mxu0  ;;  %v628_v26 = vld [vmem:[#allocation2 + $0xe0] sm:$0xff] }
 0x2db   : > { %971 = vst [vmem:[#allocation2 + $0x90] sm:$0xff] %v939_v30  ;;  %959 = vst [vmem:[#allocation2 + $0x30] sm:$0xff] %v927_v32  ;;  %v629_v30 = vld [vmem:[#allocation2 + $0xe8] sm:$0xff] }
 0x2dc   : > { %v857_v36 = vpop.f32.mrb[14].mxu1  ;;  %v797_v37 = vpop.f32.mrb[46].mxu0 }
 0x2dd   : > { %v940_v38 = vadd.f32 %v857_v36, %v619_v34  ;;  %v859_v39 = vpop.f32.mrb[15].mxu1  ;;  %v928_v40 = vadd.f32 %v797_v37, %v607_v35  ;;  %v799_v41 = vpop.f32.mrb[47].mxu0  ;;  %v630_v34 = vld [vmem:[#allocation2 + $0xf0] sm:$0xff] }
 0x2df   : > { %972 = vst [vmem:[#allocation2 + $0x98] sm:$0xff] %v940_v38  ;;  %960 = vst [vmem:[#allocation2 + $0x38] sm:$0xff] %v928_v40  ;;  %v631_v38 = vld [vmem:[#allocation2 + $0xf8] sm:$0xff] }
 0x2e0   : > { %v862_v44 = vpop.f32.mrb[16].mxu1  ;;  %v802_v45 = vpop.f32.mrb[48].mxu0 }
 0x2e1   : > { %v941_v46 = vadd.f32 %v862_v44, %v620_v42  ;;  %v864_v47 = vpop.f32.mrb[17].mxu1  ;;  %v929_v48 = vadd.f32 %v802_v45, %v608_v43  ;;  %v804_v49 = vpop.f32.mrb[49].mxu0  ;;  %v989_v42 = vld [vmem:[#allocation2] sm:$0xff] (!%p1276_p5)  ;;  %v990_v44 = vld [vmem:[#allocation2 + $0x8] sm:$0xff] (!%p1276_p5) }
 0x2e2   : > { %v2387_v43 = vld [vmem:[%s2605_s15] ss:$0 sm:$0xff] (!%p1276_p5)  ;;  %v991_v47 = vld [vmem:[#allocation2 + $0x10] sm:$0xff] (!%p1276_p5) }
 0x2e3   : > { %973 = vst [vmem:[#allocation2 + $0xa0] sm:$0xff] %v941_v46  ;;  %961 = vst [vmem:[#allocation2 + $0x40] sm:$0xff] %v929_v48  ;;  %v1028_v45 = vadd.f32 (!%p1276_p5), %v2387_v43, %v989_v42  ;;  %v1029_v46 = vadd.f32 (!%p1276_p5), %v2387_v43, %v990_v44  ;;  %v992_v48 = vld [vmem:[#allocation2 + $0x18] sm:$0xff] (!%p1276_p5)  ;;  %v993_v49 = vld [vmem:[#allocation2 + $0x20] sm:$0xff] (!%p1276_p5) }
 0x2e4   : > { %v867_v52 = vpop.f32.mrb[18].mxu1  ;;  %v807_v53 = vpop.f32.mrb[50].mxu0 }
 0x2e5   : > { %v942_v54 = vadd.f32 %v867_v52, %v621_v50  ;;  %v869_v55 = vpop.f32.mrb[19].mxu1  ;;  %v930_v56 = vadd.f32 %v807_v53, %v609_v51  ;;  %v809_v57 = vpop.f32.mrb[51].mxu0  ;;  %v1030_v50 = vadd.f32 (!%p1276_p5), %v2387_v43, %v991_v47  ;;  %v1031_v51 = vadd.f32 (!%p1276_p5), %v2387_v43, %v992_v48  ;;  %v994_v53 = vld [vmem:[#allocation2 + $0x28] sm:$0xff] (!%p1276_p5) }
 0x2e6   : > { %v1032_v52 = vadd.f32 (!%p1276_p5), %v2387_v43, %v993_v49  ;;  %v996_v55 = vld [vmem:[#allocation2 + $0x38] sm:$0xff] (!%p1276_p5)  ;;  %v1061_v57 = vmax.f32 (!%p1276_p5), %v1029_v46, 0.0 }
 0x2e7   : > { %974 = vst [vmem:[#allocation2 + $0xa8] sm:$0xff] %v942_v54  ;;  %962 = vst [vmem:[#allocation2 + $0x48] sm:$0xff] %v930_v56  ;;  %v995_v54 = vld [vmem:[#allocation2 + $0x30] sm:$0xff] (!%p1276_p5)  ;;  %v1060_v56 = vmax.f32 (!%p1276_p5), %v1028_v45, 0.0 }
 0x2e8   : > { %v872_v60 = vpop.f32.mrb[20].mxu1  ;;  %v812_v61 = vpop.f32.mrb[52].mxu0  ;;  %1093 = vst [vmem:[%s2252_s9 + $0x8] sm:$0xff] (!%p1276_p5), %v1061_v57 }
 0x2e9   : > { %v943_v62 = vadd.f32 %v872_v60, %v622_v58  ;;  %v874_v63 = vpop.f32.mrb[21].mxu1  ;;  %v931_v0 = vadd.f32 %v812_v61, %v610_v59  ;;  %v814_v1 = vpop.f32.mrb[53].mxu0  ;;  %v1033_v58 = vadd.f32 (!%p1276_p5), %v2387_v43, %v994_v53  ;;  %v1034_v59 = vadd.f32 (!%p1276_p5), %v2387_v43, %v995_v54  ;;  %1092 = vst [vmem:[%s2252_s9] sm:$0xff] (!%p1276_p5), %v1060_v56 }
 0x2ea   : > { %v997_v60 = vld [vmem:[#allocation2 + $0x40] sm:$0xff] (!%p1276_p5)  ;;  %v1062_v63 = vmax.f32 (!%p1276_p5), %v1030_v50, 0.0  ;;  %v1064_v1 = vmax.f32 (!%p1276_p5), %v1032_v52, 0.0 }
 0x2eb   : > { %975 = vst [vmem:[#allocation2 + $0xb0] sm:$0xff] %v943_v62  ;;  %963 = vst [vmem:[#allocation2 + $0x50] sm:$0xff] %v931_v0  ;;  %v1063_v0 = vmax.f32 (!%p1276_p5), %v1031_v51, 0.0 }
 0x2ec   : > { %v877_v4 = vpop.f32.mrb[22].mxu1  ;;  %v817_v5 = vpop.f32.mrb[54].mxu0  ;;  %1094 = vst [vmem:[%s2252_s9 + $0x10] sm:$0xff] (!%p1276_p5), %v1062_v63  ;;  %1096 = vst [vmem:[%s2252_s9 + $0x20] sm:$0xff] (!%p1276_p5), %v1064_v1 }
 0x2ed   : > { %v944_v6 = vadd.f32 %v877_v4, %v623_v2  ;;  %v879_v7 = vpop.f32.mrb[23].mxu1  ;;  %v932_v8 = vadd.f32 %v817_v5, %v611_v3  ;;  %v819_v9 = vpop.f32.mrb[55].mxu0  ;;  %v1035_v2 = vadd.f32 (!%p1276_p5), %v2387_v43, %v996_v55  ;;  %v1001_v4 = vld [vmem:[#allocation2 + $0x60] sm:$0xff] (!%p1276_p5)  ;;  %v1002_v5 = vld [vmem:[#allocation2 + $0x68] sm:$0xff] (!%p1276_p5)  ;;  %1095 = vst [vmem:[%s2252_s9 + $0x18] sm:$0xff] (!%p1276_p5), %v1063_v0 }
 0x2ee   : > { %v998_v61 = vld [vmem:[#allocation2 + $0x48] sm:$0xff] (!%p1276_p5)  ;;  %v1066_v7 = vmax.f32 (!%p1276_p5), %v1034_v59, 0.0 }
 0x2ef   : > { %976 = vst [vmem:[#allocation2 + $0xb8] sm:$0xff] %v944_v6  ;;  %964 = vst [vmem:[#allocation2 + $0x58] sm:$0xff] %v932_v8  ;;  %v1065_v6 = vmax.f32 (!%p1276_p5), %v1033_v58, 0.0  ;;  %v1036_v8 = vadd.f32 (!%p1276_p5), %v2387_v43, %v997_v60  ;;  %v1037_v9 = vadd.f32 (!%p1276_p5), %v2387_v43, %v998_v61 }
 0x2f0   : > { %v882_v11 = vpop.f32.mrb[24].mxu1  ;;  %1098 = vst [vmem:[%s2252_s9 + $0x30] sm:$0xff] (!%p1276_p5), %v1066_v7 }
 0x2f1   : > { %v945_v12 = vadd.f32 %v882_v11, %v624_v10  ;;  %v884_v13 = vpop.f32.mrb[25].mxu1  ;;  %v1003_v10 = vld [vmem:[#allocation2 + $0x70] sm:$0xff] (!%p1276_p5)  ;;  %v1004_v11 = vld [vmem:[#allocation2 + $0x78] sm:$0xff] (!%p1276_p5)  ;;  %1097 = vst [vmem:[%s2252_s9 + $0x28] sm:$0xff] (!%p1276_p5), %v1065_v6 }
 0x2f2   : > { %v999_v62 = vld [vmem:[#allocation2 + $0x50] sm:$0xff] (!%p1276_p5) }
 0x2f3   : > { %977 = vst [vmem:[#allocation2 + $0xc0] sm:$0xff] %v945_v12  ;;  %v1067_v12 = vmax.f32 (!%p1276_p5), %v1035_v2, 0.0  ;;  %v1038_v13 = vadd.f32 (!%p1276_p5), %v2387_v43, %v999_v62 }
 0x2f4   : > { %v887_v15 = vpop.f32.mrb[26].mxu1 }
 0x2f5   : > { %v946_v16 = vadd.f32 %v887_v15, %v625_v14  ;;  %v889_v17 = vpop.f32.mrb[27].mxu1  ;;  %v1040_v15 = vadd.f32 (!%p1276_p5), %v2387_v43, %v1001_v4  ;;  %1099 = vst [vmem:[%s2252_s9 + $0x38] sm:$0xff] (!%p1276_p5), %v1067_v12 }
 0x2f6   : > { %v1000_v3 = vld [vmem:[#allocation2 + $0x58] sm:$0xff] (!%p1276_p5)  ;;  %v1006_v17 = vld [vmem:[#allocation2 + $0x88] sm:$0xff] (!%p1276_p5) }
 0x2f7   : > { %978 = vst [vmem:[#allocation2 + $0xc8] sm:$0xff] %v946_v16  ;;  %v1039_v14 = vadd.f32 (!%p1276_p5), %v2387_v43, %v1000_v3  ;;  %v1005_v16 = vld [vmem:[#allocation2 + $0x80] sm:$0xff] (!%p1276_p5) }
 0x2f8   : > { %v892_v19 = vpop.f32.mrb[28].mxu1 }
 0x2f9   : > { %v947_v20 = vadd.f32 %v892_v19, %v626_v18  ;;  %v894_v21 = vpop.f32.mrb[29].mxu1  ;;  %v1068_v18 = vmax.f32 (!%p1276_p5), %v1036_v8, 0.0  ;;  %v1069_v19 = vmax.f32 (!%p1276_p5), %v1037_v9, 0.0 }
 0x2fa   : > { %v1042_v21 = vadd.f32 (!%p1276_p5), %v2387_v43, %v1003_v10 }
 0x2fb   : > { %979 = vst [vmem:[#allocation2 + $0xd0] sm:$0xff] %v947_v20  ;;  %v1041_v20 = vadd.f32 (!%p1276_p5), %v2387_v43, %v1002_v5  ;;  %1100 = vst [vmem:[%s2252_s9 + $0x40] sm:$0xff] (!%p1276_p5), %v1068_v18 }
 0x2fc   : > { %v897_v23 = vpop.f32.mrb[30].mxu1  ;;  %1101 = vst [vmem:[%s2252_s9 + $0x48] sm:$0xff] (!%p1276_p5), %v1069_v19 }
 0x2fd   : > { %v948_v24 = vadd.f32 %v897_v23, %v627_v22  ;;  %v899_v25 = vpop.f32.mrb[31].mxu1  ;;  %v1007_v22 = vld [vmem:[#allocation2 + $0x90] sm:$0xff] (!%p1276_p5)  ;;  %v1008_v23 = vld [vmem:[#allocation2 + $0x98] sm:$0xff] (!%p1276_p5) }
 0x2fe   : > { %v1070_v25 = vmax.f32 (!%p1276_p5), %v1038_v13, 0.0 }
 0x2ff   : > { %980 = vst [vmem:[#allocation2 + $0xd8] sm:$0xff] %v948_v24  ;;  %v1009_v24 = vld [vmem:[#allocation2 + $0xa0] sm:$0xff] (!%p1276_p5) }
 0x300   : > { %v902_v27 = vpop.f32.mrb[32].mxu1  ;;  %1102 = vst [vmem:[%s2252_s9 + $0x50] sm:$0xff] (!%p1276_p5), %v1070_v25 }
 0x301   : > { %v949_v28 = vadd.f32 %v902_v27, %v628_v26  ;;  %v904_v29 = vpop.f32.mrb[33].mxu1  ;;  %v1071_v26 = vmax.f32 (!%p1276_p5), %v1039_v14, 0.0  ;;  %v1072_v27 = vmax.f32 (!%p1276_p5), %v1040_v15, 0.0 }
 0x302   : > { %v1010_v29 = vld [vmem:[#allocation2 + $0xa8] sm:$0xff] (!%p1276_p5)  ;;  %v1015_v47 = vld [vmem:[#allocation2 + $0xd0] sm:$0xff] (!%p1276_p5) }
 0x303   : > { %981 = vst [vmem:[#allocation2 + $0xe0] sm:$0xff] %v949_v28  ;;  %v1043_v28 = vadd.f32 (!%p1276_p5), %v2387_v43, %v1004_v11  ;;  %1103 = vst [vmem:[%s2252_s9 + $0x58] sm:$0xff] (!%p1276_p5), %v1071_v26  ;;  %v1049_v45 = vadd.f32 (!%p1276_p5), %v2387_v43, %v1010_v29  ;;  %v1054_v62 = vadd.f32 (!%p1276_p5), %v2387_v43, %v1015_v47 }
 0x304   : > { %v907_v31 = vpop.f32.mrb[34].mxu1  ;;  %1104 = vst [vmem:[%s2252_s9 + $0x60] sm:$0xff] (!%p1276_p5), %v1072_v27 }
 0x305   : > { %v950_v32 = vadd.f32 %v907_v31, %v629_v30  ;;  %v909_v33 = vpop.f32.mrb[35].mxu1  ;;  %v1011_v30 = vld [vmem:[#allocation2 + $0xb0] sm:$0xff] (!%p1276_p5)  ;;  %v1073_v31 = vmax.f32 (!%p1276_p5), %v1041_v20, 0.0  ;;  %v1081_v56 = vmax.f32 (!%p1276_p5), %v1049_v45, 0.0  ;;  %v1086_v5 = vmax.f32 (!%p1276_p5), %v1054_v62, 0.0 }
 0x306   : > { %v1044_v33 = vadd.f32 (!%p1276_p5), %v2387_v43, %v1005_v16  ;;  %v1050_v46 = vadd.f32 (!%p1276_p5), %v2387_v43, %v1011_v30  ;;  %v1016_v48 = vld [vmem:[#allocation2 + $0xd8] sm:$0xff] (!%p1276_p5) }
 0x307   : > { %982 = vst [vmem:[#allocation2 + $0xe8] sm:$0xff] %v950_v32  ;;  %v1074_v32 = vmax.f32 (!%p1276_p5), %v1042_v21, 0.0  ;;  %1105 = vst [vmem:[%s2252_s9 + $0x68] sm:$0xff] (!%p1276_p5), %v1073_v31  ;;  %v1055_v63 = vadd.f32 (!%p1276_p5), %v2387_v43, %v1016_v48 }
 0x308   : > { %v912_v35 = vpop.f32.mrb[36].mxu1  ;;  %v1076_v42 = vmax.f32 (!%p1276_p5), %v1044_v33, 0.0  ;;  %v1082_v57 = vmax.f32 (!%p1276_p5), %v1050_v46, 0.0  ;;  %1113 = vst [vmem:[%s2252_s9 + $0xa8] sm:$0xff] (!%p1276_p5), %v1081_v56  ;;  %1118 = vst [vmem:[%s2252_s9 + $0xd0] sm:$0xff] (!%p1276_p5), %v1086_v5 }
 0x309   : > { %v951_v36 = vadd.f32 %v912_v35, %v630_v34  ;;  %v914_v37 = vpop.f32.mrb[37].mxu1  ;;  %988 = sbr.rel (%p1276_p5) target bundleno = 796 (0x31c), region = 56  ;;  %v1045_v34 = vadd.f32 (!%p1276_p5), %v2387_v43, %v1006_v17  ;;  %v1012_v35 = vld [vmem:[#allocation2 + $0xb8] sm:$0xff] (!%p1276_p5)  ;;  %1106 = vst [vmem:[%s2252_s9 + $0x70] sm:$0xff] (!%p1276_p5), %v1074_v32  ;;  %v1087_v6 = vmax.f32 (!%p1276_p5), %v1055_v63, 0.0 }
 0x30a   : > { %v1046_v37 = vadd.f32 (!%p1276_p5), %v2387_v43, %v1007_v22  ;;  %v1017_v49 = vld [vmem:[#allocation2 + $0xe0] sm:$0xff] (!%p1276_p5)  ;;  %v1051_v53 = vadd.f32 (!%p1276_p5), %v2387_v43, %v1012_v35  ;;  %1108 = vst [vmem:[%s2252_s9 + $0x80] sm:$0xff] (!%p1276_p5), %v1076_v42  ;;  %1114 = vst [vmem:[%s2252_s9 + $0xb0] sm:$0xff] (!%p1276_p5), %v1082_v57 }
 0x30b   : > { %983 = vst [vmem:[#allocation2 + $0xf0] sm:$0xff] %v951_v36  ;;  %v1075_v36 = vmax.f32 (!%p1276_p5), %v1043_v28, 0.0  ;;  %v1077_v44 = vmax.f32 (!%p1276_p5), %v1045_v34, 0.0  ;;  %v1056_v0 = vadd.f32 (!%p1276_p5), %v2387_v43, %v1017_v49  ;;  %1119 = vst [vmem:[%s2252_s9 + $0xd8] sm:$0xff] (!%p1276_p5), %v1087_v6 }
 0x30c   : > { %v917_v39 = vpop.f32.mrb[38].mxu1  ;;  %v1078_v50 = vmax.f32 (!%p1276_p5), %v1046_v37, 0.0  ;;  %v1083_v61 = vmax.f32 (!%p1276_p5), %v1051_v53, 0.0 }
 0x30d   : > { %v952_v40 = vadd.f32 %v917_v39, %v631_v38  ;;  %v919_v41 = vpop.f32.mrb[39].mxu1  ;;  %v1047_v38 = vadd.f32 (!%p1276_p5), %v2387_v43, %v1008_v23  ;;  %v1048_v39 = vadd.f32 (!%p1276_p5), %v2387_v43, %v1009_v24  ;;  %1107 = vst [vmem:[%s2252_s9 + $0x78] sm:$0xff] (!%p1276_p5), %v1075_v36  ;;  %1109 = vst [vmem:[%s2252_s9 + $0x88] sm:$0xff] (!%p1276_p5), %v1077_v44  ;;  %v1088_v7 = vmax.f32 (!%p1276_p5), %v1056_v0, 0.0 }
 0x30e   : > { %v1014_v41 = vld [vmem:[#allocation2 + $0xc8] sm:$0xff] (!%p1276_p5)  ;;  %1110 = vst [vmem:[%s2252_s9 + $0x90] sm:$0xff] (!%p1276_p5), %v1078_v50  ;;  %1115 = vst [vmem:[%s2252_s9 + $0xb8] sm:$0xff] (!%p1276_p5), %v1083_v61 }
 0x30f   : > { %984 = vst [vmem:[#allocation2 + $0xf8] sm:$0xff] %v952_v40  ;;  %v1013_v40 = vld [vmem:[#allocation2 + $0xc0] sm:$0xff] (!%p1276_p5)  ;;  %v1079_v51 = vmax.f32 (!%p1276_p5), %v1047_v38, 0.0  ;;  %v1080_v52 = vmax.f32 (!%p1276_p5), %v1048_v39, 0.0  ;;  %v1018_v54 = vld [vmem:[#allocation2 + $0xe8] sm:$0xff] (!%p1276_p5)  ;;  %v1053_v59 = vadd.f32 (!%p1276_p5), %v2387_v43, %v1014_v41  ;;  %1120 = vst [vmem:[%s2252_s9 + $0xe0] sm:$0xff] (!%p1276_p5), %v1088_v7 }
 0x310   : > { %v1052_v58 = vadd.f32 %v2387_v43, %v1013_v40  ;;  %v1057_v3 = vadd.f32 %v2387_v43, %v1018_v54 }
 0x311   : > { %1111 = vst [vmem:[%s2252_s9 + $0x98] sm:$0xff] %v1079_v51  ;;  %1112 = vst [vmem:[%s2252_s9 + $0xa0] sm:$0xff] %v1080_v52  ;;  %v1085_v2 = vmax.f32 %v1053_v59, 0.0 }
 0x312   : > { %v1019_v55 = vld [vmem:[#allocation2 + $0xf0] sm:$0xff]  ;;  %v1084_v1 = vmax.f32 %v1052_v58, 0.0  ;;  %v1089_v9 = vmax.f32 %v1057_v3, 0.0 }
 0x313   : > { %v1058_v4 = vadd.f32 %v2387_v43, %v1019_v55  ;;  %1117 = vst [vmem:[%s2252_s9 + $0xc8] sm:$0xff] %v1085_v2 }
 0x314   : > { %1116 = vst [vmem:[%s2252_s9 + $0xc0] sm:$0xff] %v1084_v1  ;;  %1121 = vst [vmem:[%s2252_s9 + $0xe8] sm:$0xff] %v1089_v9 }
 0x315   : > { %v1090_v10 = vmax.f32 %v1058_v4, 0.0 }
 0x316   : > { %v1020_v60 = vld [vmem:[#allocation2 + $0xf8] sm:$0xff] }
 0x317   : > { %v1059_v8 = vadd.f32 %v2387_v43, %v1020_v60  ;;  %1122 = vst [vmem:[%s2252_s9 + $0xf0] sm:$0xff] %v1090_v10 }
 0x319   : > { %v1091_v11 = vmax.f32 %v1059_v8, 0.0 }
 0x31b   : > { %1123 = vst [vmem:[%s2252_s9 + $0xf8] sm:$0xff] %v1091_v11 }
 0x31c PF: > { %s2606_s14 = sld [smem:[#allocation17_spill]]  ;;  %s2608_s13 = sld [smem:[#allocation20_spill]] }
 0x31d   : > { %s2609_s21 = sld [smem:[#allocation26_spill]]  ;;  %s1138_s6 = sshll.u32 %s2252_s9, 4  ;;  %s2460_s6 = int_to_ptr.vmem [resolvable:$true] %s1138_s6 }
 0x31e   : > { %s2464_s5 = scalar_lea.sflag [#allocation5], %s284_s16  ;;  %s1765_s30 = scalar_lea.vmem %s2460_s6, 4096 }
 0x31f   : > { %p1766_p2 = scmp.ne.s32.totalorder %s2460_s6, %s1765_s30  ;;  %s1931_s12 = smov [#allocation9]  }
 0x320   : > { %s1769_s24 = sshll.u32 %s1931_s12, 4  ;;  %s1770_s24 = int_to_ptr.vmem [resolvable:$false] %s1769_s24 }
 0x321   : > { %s1771_s3 = scalar_lea.vmem %s1770_s24, 8192  ;;  %p1772_p4 = scmp.lt.s32.totalorder %s2460_s6, %s1770_s24 }
 0x322   : > { %s1285_s29 = sshll.u32 %s2606_s14, 12  ;;  %p2611_p10 = scmp.ne.s32.totalorder %s2608_s13, 0 }
 0x323   : > { %s2610_s10 = smov %s2609_s21  ;;  %s2457_s2 = scalar_lea.hbm %s2609_s21, %s1285_s29 }
 0x324   : > { %p1767_p7 = pnand %p1766_p2, %p2611_p10  ;;  %p1773_p8 = scmp.lt.s32.totalorder %s1771_s3, %s1765_s30 }
 0x326   : > { %p1768_p11 = pneg %p1767_p7  ;;  %p1774_p12 = por %p1773_p8, %p1772_p4 }
 0x328   : > { %p1775_p13 = pnand %p1774_p12, %p1768_p11 }
 0x32a   : > { %1778 = shalt.err (!%p1775_p13)
}
 0x32b   : > { %s1779_s16 = scalar_lea.hbm %s2457_s2, 4096  ;;  %s1783_s14 = scalar_lea.hbm %s2610_s10, 8192 }
 0x32c   : > { %p1780_p6 = scmp.ne.s32.totalorder %s2457_s2, %s1779_s16  ;;  %p1784_p3 = scmp.lt.u32.totalorder %s2457_s2, %s2610_s10 }
 0x32d   : > { %p1785_p9 = scmp.lt.u32.totalorder %s1783_s14, %s1779_s16  ;;  %p1787_p2 = scmp.lt.u32.totalorder %s1779_s16, %s2457_s2 }
 0x32e   : > { %p1781_p0 = pnand %p1780_p6, %p2611_p10 }
 0x32f   : > { %p1786_p5 = por %p1785_p9, %p1784_p3 }
 0x330   : > { %p1782_p1 = pneg %p1781_p0 }
 0x331   : > { %p1788_p7 = por %p1787_p2, %p1786_p5 }
 0x333   : > { %p1789_p11 = pnand %p1788_p7, %p1782_p1 }
 0x335   : > { %1792 = shalt.err (!%p1789_p11)
}
 0x336   : > { %s1932_s8 = smov 128   ;;  %s1933_s11 = smov 8  }
 0x337   : > { %1534 = dma.vmem_to_hbm [thread:$0]  (%p2611_p10), %s2460_s6, 4096, %s2457_s2, %s2464_s5, %s1932_s8, %s1932_s8, %s1933_s11  }
 0x338 PF: > { %s2612_s21 = sld [smem:[#allocation14_spill]]  ;;  %s2613_s30 = sld [smem:[#allocation21_spill]] }
 0x339   : > { %p1554_p4 = scmp.ge.s32.totalorder %s1919_s28, 2 }
 0x33e   : > { %s1153_s12 = sand.u32 1, %s2612_s21   ;;  %p2614_p8 = scmp.ne.s32.totalorder %s2613_s30, 0 }
 0x33f   : > { %s1154_s24 = scalar_lea.sflag [#allocation5], %s1153_s12 }
 0x340   : > { %p1548_p12 = pnand %p1554_p4, %p2614_p8 }
 0x342   : > { %1862 = dma.done.wait (!%p1548_p12), %s1154_s24, 4096  }
 0x343   : > { %1864 = vsyncadd (!%p1548_p12), %s1154_s24, 4294963200  ;;  %s23_s28 = sadd.s32 1, %s1919_s28   ;;  %s2616_s15 = sld [smem:[#allocation15_spill]] }
 0x344   : > { %p2493_p13 = scmp.ge.s32.totalorder %s23_s28, 6   ;;  %s2617_s13 = sld [smem:[#allocation22_spill]] }
 0x345   : > { %s2618_s2 = sld [smem:[#allocation23_spill]]  ;;  %s2619_s16 = smov %s1875_s17 }
 0x346   : > { %s2620_s17 = smov %s2122_s18  ;;  %s2621_s18 = smov %s1883_s19 }
 0x347   : > { %s2622_s19 = smov %s1887_s20  ;;  %s2623_s20 = smov %s2178_s7 }
 0x348   : > { %s2624_s21 = smov %s1895_s22  ;;  %s2625_s22 = smov %s1899_s23 }
 0x349   : > { %s2626_s23 = smov %s2125_s4  ;;  %s2627_s24 = smov %s1911_s26 }
 0x34a   : > { %s2628_s25 = smov %s1915_s27  ;;  %s2629_s26 = smov %s2617_s13 }
 0x34b   : > { %s2630_s27 = smov %s2618_s2  ;;  %22 = sbr.rel (!%p2493_p13) target bundleno = 16 (0x10), region = 106 }
 0x352   :  { %1159 = vsyncpa [#allocation4], 1 }
 0x353   :  { %1161 = vsyncpa [#allocation4 + $0x1], 1 }
 0x354   :  { %1162 = vsyncpa [#allocation7], 1 }
 0x355   :  { %1164 = vsyncpa [#allocation7 + $0x1], 1 }
 0x356   :  { %1165 = vsyncpa [#allocation5], 1 }
 0x357   :  { %1167 = vsyncpa [#allocation5 + $0x1], 1 }

</bundles_post_ra>
